<compile_context>
chip_gen: v6e
topology: v6e:2x2x1
jax: 0.10.0
libtpu: 0.0.40
codegen_flags: <defaults>
</compile_context>

<pallas_src>
import functools

import jax
import jax.numpy as jnp
from jax.experimental import pallas as pl
from jax.experimental.pallas import tpu as pltpu


def _conv_stats_kernel(x_ref, w_ref, y_ref, psum_ref, psumsq_ref, col_ref,
                       *, stride, kh, kw, tile_h, wo, cin, cout):
    """One (batch, H-tile) grid step of the masked convolution.

    x_ref   : (1, Hp, Wp, Cin)        spatially pre-padded input (bf16)
    w_ref   : (KH*KW*Cin, Cout)       masked im2col weight       (bf16)
    y_ref   : (1, TILE_H*Wo, Cout)    conv output tile           (f32)
    psum    : (1, 1, 1, Cout)         per-tile channel sum       (f32)
    psumsq  : (1, 1, 1, Cout)         per-tile channel sum-of-sq (f32)
    col_ref : (TILE_H*Wo, KH*KW*Cin)  im2col scratch             (bf16)
    """
    h = pl.program_id(1)
    h0 = pl.multiple_of(h * (tile_h * stride), tile_h * stride)
    win_h = (tile_h - 1) * stride + kh
    xwin = x_ref[0, pl.ds(h0, win_h), :, :]               # (win_h, Wp, Cin)

    # Build the im2col patch matrix in VMEM: one wide contraction instead of
    # KH*KW tiny [rows, Cin] matmuls (MXU contraction dim = KH*KW*Cin).
    for i in range(kh):
        for j in range(kw):
            if stride == 1:
                patch = xwin[i:i + tile_h, j:j + wo, :]
            else:
                # TODO(synk): stride>1 uses an in-kernel strided slice (sublane
                # gather); a wrapper-side phase split would be faster.
                patch = jax.lax.slice(
                    xwin, (i, j, 0),
                    (i + (tile_h - 1) * stride + 1,
                     j + (wo - 1) * stride + 1, cin),
                    (stride, stride, 1))
            t = i * kw + j
            col_ref[:, t * cin:(t + 1) * cin] = patch.reshape(tile_h * wo, cin)

    # Single MXU matmul: bf16 operands, f32 accumulation.
    acc = jnp.dot(col_ref[...], w_ref[...], preferred_element_type=jnp.float32)

    # Per-channel partial statistics for the two-stage (tiled) BatchNorm.
    psum_ref[...] = jnp.sum(acc, axis=0).reshape(1, 1, 1, cout)
    psumsq_ref[...] = jnp.sum(acc * acc, axis=0).reshape(1, 1, 1, cout)

    y_ref[...] = acc.reshape(1, tile_h * wo, cout)


def _bn_silu_kernel(y_ref, s_ref, b_ref, o_ref):
    """Fused BatchNorm affine + SiLU; all arrays lane-dense (last dim = Wo*Cout)."""
    z = y_ref[...] * s_ref[...] + b_ref[...]
    o_ref[...] = z * jax.nn.sigmoid(z)


def _pick_tile_h(ho):
    # 8 output rows per tile keeps output blocks sublane-aligned and the
    # per-step VMEM footprint well inside every generation's scoped budget
    # (v7x has only 64 MiB physical VMEM).  Fall back to the full extent when
    # Ho is not a multiple of 8 (full-extent block dims are always legal).
    return 8 if ho % 8 == 0 else ho


def base_conv_with_mask(x_nchw, weight_oihw, conv_mask_oihw, gamma, beta,
                        *, stride=1, eps=1e-5):
    """Forward of BaseConvWithMask (conv bias=False, groups=1, dilation=1)."""
    N, Cin, H, W = x_nchw.shape
    Cout, _, KH, KW = weight_oihw.shape
    pad = (KH - 1) // 2
    Ho = (H + 2 * pad - KH) // stride + 1
    Wo = (W + 2 * pad - KW) // stride + 1
    Hp, Wp = H + 2 * pad, W + 2 * pad

    tile_h = _pick_tile_h(Ho)
    ht = Ho // tile_h
    k_dim = KH * KW * Cin

    # ---- layout glue (plain JAX) -------------------------------------------
    # NHWC, spatially pre-padded, bf16 matmul operand (halves conv DMA bytes).
    x = jnp.transpose(x_nchw, (0, 2, 3, 1)).astype(jnp.float32)
    x = jnp.pad(x, ((0, 0), (pad, pad), (pad, pad), (0, 0))).astype(jnp.bfloat16)
    # masked weight: OIHW -> (KH, KW, Cin, Cout) -> im2col (KH*KW*Cin, Cout).
    mw = (weight_oihw * conv_mask_oihw).astype(jnp.float32)
    w = jnp.transpose(mw, (2, 3, 1, 0)).reshape(k_dim, Cout).astype(jnp.bfloat16)

    # ---- stage 1: conv + per-tile channel sum / sum-of-squares --------------
    conv_flops = 2 * N * Ho * Wo * k_dim * Cout
    conv_bytes = x.size * 2 + w.size * 2 + N * Ho * Wo * Cout * 4

    kernel1 = functools.partial(
        _conv_stats_kernel, stride=stride, kh=KH, kw=KW,
        tile_h=tile_h, wo=Wo, cin=Cin, cout=Cout)
    y, psum, psumsq = pl.pallas_call(
        kernel1,
        out_shape=(
            jax.ShapeDtypeStruct((N, Ho * Wo, Cout), jnp.float32),
            jax.ShapeDtypeStruct((N, ht, 1, Cout), jnp.float32),
            jax.ShapeDtypeStruct((N, ht, 1, Cout), jnp.float32),
        ),
        grid_spec=pltpu.PrefetchScalarGridSpec(
            num_scalar_prefetch=0,
            grid=(N, ht),
            in_specs=[
                # Per-batch padded image stays VMEM-resident across the inner
                # H-tile axis (block index unchanged -> no re-fetch); the
                # overlapping H window is sliced in-kernel with pl.ds since
                # overlapping windows aren't expressible as Blocked tiles.
                pl.BlockSpec((1, Hp, Wp, Cin), lambda n, h: (n, 0, 0, 0)),
                pl.BlockSpec((k_dim, Cout), lambda n, h: (0, 0)),
            ],
            out_specs=[
                pl.BlockSpec((1, tile_h * Wo, Cout), lambda n, h: (n, h, 0)),
                pl.BlockSpec((1, 1, 1, Cout), lambda n, h: (n, h, 0, 0)),
                pl.BlockSpec((1, 1, 1, Cout), lambda n, h: (n, h, 0, 0)),
            ],
            scratch_shapes=[pltpu.VMEM((tile_h * Wo, k_dim), jnp.bfloat16)],
        ),
        compiler_params=pltpu.CompilerParams(
            dimension_semantics=("parallel", "parallel"),   # megacore on v7x
            vmem_limit_bytes=32 * 1024 * 1024,              # fits v5e/v6e/v7x
        ),
        cost_estimate=pl.CostEstimate(
            flops=conv_flops, transcendentals=0, bytes_accessed=conv_bytes),
    )(x, w)

    # ---- BatchNorm batch statistics (training semantics, biased variance) ---
    cnt = N * Ho * Wo
    mean = jnp.sum(psum, axis=(0, 1, 2)) / cnt
    var = jnp.maximum(jnp.sum(psumsq, axis=(0, 1, 2)) / cnt - mean * mean, 0.0)
    scale = gamma.astype(jnp.float32) * jax.lax.rsqrt(var + eps)
    shift = beta.astype(jnp.float32) - mean * scale
    # Tile per-channel affine into the lane-dense (Wo*Cout) slab layout.
    scale_row = jnp.tile(scale, Wo).reshape(1, 1, Wo * Cout)
    shift_row = jnp.tile(shift, Wo).reshape(1, 1, Wo * Cout)

    # (N, Ho*Wo, Cout) -> (N, Ho, Wo*Cout): free row-major reshape in HBM; the
    # BN/SiLU pass (and the final store) then runs on 128-lane-dense vregs.
    y_slab = y.reshape(N, Ho, Wo * Cout)

    # ---- stage 2: fused BN affine + SiLU -------------------------------------
    ew_bytes = 2 * N * Ho * Wo * Cout * 4 + 2 * Wo * Cout * 4
    out_slab = pl.pallas_call(
        _bn_silu_kernel,
        out_shape=jax.ShapeDtypeStruct((N, Ho, Wo * Cout), jnp.float32),
        grid_spec=pltpu.PrefetchScalarGridSpec(
            num_scalar_prefetch=0,
            grid=(N, ht),
            in_specs=[
                pl.BlockSpec((1, tile_h, Wo * Cout), lambda n, h: (n, h, 0)),
                pl.BlockSpec((1, 1, Wo * Cout), lambda n, h: (0, 0, 0)),
                pl.BlockSpec((1, 1, Wo * Cout), lambda n, h: (0, 0, 0)),
            ],
            out_specs=pl.BlockSpec((1, tile_h, Wo * Cout), lambda n, h: (n, h, 0)),
        ),
        compiler_params=pltpu.CompilerParams(
            dimension_semantics=("parallel", "parallel"),
            vmem_limit_bytes=32 * 1024 * 1024,
        ),
        cost_estimate=pl.CostEstimate(
            flops=4 * N * Ho * Wo * Cout,
            transcendentals=N * Ho * Wo * Cout,
            bytes_accessed=ew_bytes),
    )(y_slab, scale_row, shift_row)

    out = out_slab.reshape(N, Ho, Wo, Cout)
    return jnp.transpose(out, (0, 3, 1, 2))                # back to NCHW


def _reference(x_nchw, weight_oihw, conv_mask_oihw, gamma, beta, *, stride, eps):
    """Pure-JAX f32 reference (mirrors the PyTorch forward)."""
    mw = weight_oihw * conv_mask_oihw
    pad = (weight_oihw.shape[2] - 1) // 2
    y = jax.lax.conv_general_dilated(
        x_nchw, mw, window_strides=(stride, stride),
        padding=((pad, pad), (pad, pad)),
        dimension_numbers=("NCHW", "OIHW", "NCHW"))
    mean = jnp.mean(y, axis=(0, 2, 3), keepdims=True)
    var = jnp.mean((y - mean) ** 2, axis=(0, 2, 3), keepdims=True)
    z = (y - mean) * jax.lax.rsqrt(var + eps)
    z = z * gamma.reshape(1, -1, 1, 1) + beta.reshape(1, -1, 1, 1)
    return z * jax.nn.sigmoid(z)


if __name__ == "__main__":
    # Shapes consistent with BaseConvWithMask(4, 8, 3, 1)
    N, Cin, H, W = 2, 4, 16, 16
    Cout, K, stride = 8, 3, 1
    eps = 1e-5

    key = jax.random.PRNGKey(0)
    kx, kw_, km, kg, kb = jax.random.split(key, 5)

    x = jax.random.normal(kx, (N, Cin, H, W), jnp.float32)
    # conv weight (OIHW), kaiming-ish scale; conv has bias=False.
    weight = jax.random.normal(kw_, (Cout, Cin, K, K), jnp.float32) * (1.0 / (Cin * K * K) ** 0.5)
    # conv_mask is ones at init; use a deterministic 0/1 mask so masking is exercised.
    conv_mask = (jax.random.uniform(km, (Cout, Cin, K, K)) < 0.8).astype(jnp.float32)
    # BatchNorm affine params (perturbed from default gamma=1, beta=0).
    gamma = 1.0 + 0.1 * jax.random.normal(kg, (Cout,), jnp.float32)
    beta = 0.1 * jax.random.normal(kb, (Cout,), jnp.float32)

    fwd = jax.jit(functools.partial(base_conv_with_mask, stride=stride, eps=eps))
    out = fwd(x, weight, conv_mask, gamma, beta)
    out = jax.block_until_ready(out)

    ref = _reference(x, weight, conv_mask, gamma, beta, stride=stride, eps=eps)
    assert out.shape == (N, Cout, H, W), out.shape
    # Tolerance relaxed vs f32 reference because the conv uses bf16 MXU operands
    # (f32 accumulation); observed error is O(1e-2).
    assert jnp.allclose(out, ref, atol=4e-2, rtol=4e-2), float(jnp.max(jnp.abs(out - ref)))

    print("KERNEL_OK")
</pallas_src>

<mosaic_0001>
module attributes {stable_mosaic.version = 11 : i64} {
  func.func @_conv_stats_kernel(%arg0: i32, %arg1: i32, %arg2: memref<1x18x18x4xbf16, #tpu.memory_space<vmem>>, %arg3: memref<36x8xbf16, #tpu.memory_space<vmem>>, %arg4: memref<1x128x8xf32, #tpu.memory_space<vmem>>, %arg5: memref<1x1x1x8xf32, #tpu.memory_space<vmem>>, %arg6: memref<1x1x1x8xf32, #tpu.memory_space<vmem>>, %arg7: memref<128x36xbf16, #tpu.memory_space<vmem>>) attributes {dimension_semantics = [#tpu.dimension_semantics<parallel>, #tpu.dimension_semantics<parallel>], iteration_bounds = array<i64: 2, 2>, scalar_prefetch = 0 : i64, scratch_operands = 1 : i64, tpu.core_type = #tpu.core_type<tc>, window_params = [{transform_indices = @transform_0, window_bounds = array<i64: 1, 18, 18, 4>}, {pipeline_mode = #tpu.pipeline_mode<synchronous>, transform_indices = @transform_1, window_bounds = array<i64: 36, 8>}, {transform_indices = @transform_2, window_bounds = array<i64: 1, 128, 8>}, {transform_indices = @transform_3, window_bounds = array<i64: 1, 1, 1, 8>}, {transform_indices = @transform_4, window_bounds = array<i64: 1, 1, 1, 8>}]} {
    %c8_i32 = arith.constant 8 : i32
    %0 = arith.muli %arg1, %c8_i32 : i32
    %1 = tpu.assume_multiple %0, 8 : i32
    %c0 = arith.constant 0 : index
    %2 = arith.index_cast %1 : i32 to index
    %c0_0 = arith.constant 0 : index
    %c0_1 = arith.constant 0 : index
    %3 = vector.load %arg2[%c0, %2, %c0_0, %c0_1] : memref<1x18x18x4xbf16, #tpu.memory_space<vmem>>, vector<1x10x18x4xbf16>
    %4 = vector.shape_cast %3 : vector<1x10x18x4xbf16> to vector<10x18x4xbf16>
    %5 = vector.extract_strided_slice %4 {offsets = [0, 0, 0], sizes = [8, 16, 4], strides = [1, 1, 1]} : vector<10x18x4xbf16> to vector<8x16x4xbf16>
    %6 = vector.shape_cast %5 : vector<8x16x4xbf16> to vector<128x4xbf16>
    %c0_2 = arith.constant 0 : index
    %c0_3 = arith.constant 0 : index
    %7 = vector.load %arg7[%c0_2, %c0_3] : memref<128x36xbf16, #tpu.memory_space<vmem>>, vector<128x4xbf16>
    tpu.vector_store %arg7[%c0_2, %c0_3], %6 {strides = array<i32>} : memref<128x36xbf16, #tpu.memory_space<vmem>>, vector<128x4xbf16>,
    %8 = vector.extract_strided_slice %4 {offsets = [0, 1, 0], sizes = [8, 16, 4], strides = [1, 1, 1]} : vector<10x18x4xbf16> to vector<8x16x4xbf16>
    %9 = vector.shape_cast %8 : vector<8x16x4xbf16> to vector<128x4xbf16>
    %c0_4 = arith.constant 0 : index
    %c4 = arith.constant 4 : index
    %10 = vector.load %arg7[%c0_4, %c4] : memref<128x36xbf16, #tpu.memory_space<vmem>>, vector<128x4xbf16>
    tpu.vector_store %arg7[%c0_4, %c4], %9 {strides = array<i32>} : memref<128x36xbf16, #tpu.memory_space<vmem>>, vector<128x4xbf16>,
    %11 = vector.extract_strided_slice %4 {offsets = [0, 2, 0], sizes = [8, 16, 4], strides = [1, 1, 1]} : vector<10x18x4xbf16> to vector<8x16x4xbf16>
    %12 = vector.shape_cast %11 : vector<8x16x4xbf16> to vector<128x4xbf16>
    %c0_5 = arith.constant 0 : index
    %c8 = arith.constant 8 : index
    %13 = vector.load %arg7[%c0_5, %c8] : memref<128x36xbf16, #tpu.memory_space<vmem>>, vector<128x4xbf16>
    tpu.vector_store %arg7[%c0_5, %c8], %12 {strides = array<i32>} : memref<128x36xbf16, #tpu.memory_space<vmem>>, vector<128x4xbf16>,
    %14 = vector.extract_strided_slice %4 {offsets = [1, 0, 0], sizes = [8, 16, 4], strides = [1, 1, 1]} : vector<10x18x4xbf16> to vector<8x16x4xbf16>
    %15 = vector.shape_cast %14 : vector<8x16x4xbf16> to vector<128x4xbf16>
    %c0_6 = arith.constant 0 : index
    %c12 = arith.constant 12 : index
    %16 = vector.load %arg7[%c0_6, %c12] : memref<128x36xbf16, #tpu.memory_space<vmem>>, vector<128x4xbf16>
    tpu.vector_store %arg7[%c0_6, %c12], %15 {strides = array<i32>} : memref<128x36xbf16, #tpu.memory_space<vmem>>, vector<128x4xbf16>,
    %17 = vector.extract_strided_slice %4 {offsets = [1, 1, 0], sizes = [8, 16, 4], strides = [1, 1, 1]} : vector<10x18x4xbf16> to vector<8x16x4xbf16>
    %18 = vector.shape_cast %17 : vector<8x16x4xbf16> to vector<128x4xbf16>
    %c0_7 = arith.constant 0 : index
    %c16 = arith.constant 16 : index
    %19 = vector.load %arg7[%c0_7, %c16] : memref<128x36xbf16, #tpu.memory_space<vmem>>, vector<128x4xbf16>
    tpu.vector_store %arg7[%c0_7, %c16], %18 {strides = array<i32>} : memref<128x36xbf16, #tpu.memory_space<vmem>>, vector<128x4xbf16>,
    %20 = vector.extract_strided_slice %4 {offsets = [1, 2, 0], sizes = [8, 16, 4], strides = [1, 1, 1]} : vector<10x18x4xbf16> to vector<8x16x4xbf16>
    %21 = vector.shape_cast %20 : vector<8x16x4xbf16> to vector<128x4xbf16>
    %c0_8 = arith.constant 0 : index
    %c20 = arith.constant 20 : index
    %22 = vector.load %arg7[%c0_8, %c20] : memref<128x36xbf16, #tpu.memory_space<vmem>>, vector<128x4xbf16>
    tpu.vector_store %arg7[%c0_8, %c20], %21 {strides = array<i32>} : memref<128x36xbf16, #tpu.memory_space<vmem>>, vector<128x4xbf16>,
    %23 = vector.extract_strided_slice %4 {offsets = [2, 0, 0], sizes = [8, 16, 4], strides = [1, 1, 1]} : vector<10x18x4xbf16> to vector<8x16x4xbf16>
    %24 = vector.shape_cast %23 : vector<8x16x4xbf16> to vector<128x4xbf16>
    %c0_9 = arith.constant 0 : index
    %c24 = arith.constant 24 : index
    %25 = vector.load %arg7[%c0_9, %c24] : memref<128x36xbf16, #tpu.memory_space<vmem>>, vector<128x4xbf16>
    tpu.vector_store %arg7[%c0_9, %c24], %24 {strides = array<i32>} : memref<128x36xbf16, #tpu.memory_space<vmem>>, vector<128x4xbf16>,
    %26 = vector.extract_strided_slice %4 {offsets = [2, 1, 0], sizes = [8, 16, 4], strides = [1, 1, 1]} : vector<10x18x4xbf16> to vector<8x16x4xbf16>
    %27 = vector.shape_cast %26 : vector<8x16x4xbf16> to vector<128x4xbf16>
    %c0_10 = arith.constant 0 : index
    %c28 = arith.constant 28 : index
    %28 = vector.load %arg7[%c0_10, %c28] : memref<128x36xbf16, #tpu.memory_space<vmem>>, vector<128x4xbf16>
    tpu.vector_store %arg7[%c0_10, %c28], %27 {strides = array<i32>} : memref<128x36xbf16, #tpu.memory_space<vmem>>, vector<128x4xbf16>,
    %29 = vector.extract_strided_slice %4 {offsets = [2, 2, 0], sizes = [8, 16, 4], strides = [1, 1, 1]} : vector<10x18x4xbf16> to vector<8x16x4xbf16>
    %30 = vector.shape_cast %29 : vector<8x16x4xbf16> to vector<128x4xbf16>
    %c0_11 = arith.constant 0 : index
    %c32 = arith.constant 32 : index
    %31 = vector.load %arg7[%c0_11, %c32] : memref<128x36xbf16, #tpu.memory_space<vmem>>, vector<128x4xbf16>
    tpu.vector_store %arg7[%c0_11, %c32], %30 {strides = array<i32>} : memref<128x36xbf16, #tpu.memory_space<vmem>>, vector<128x4xbf16>,
    %c0_12 = arith.constant 0 : index
    %c0_13 = arith.constant 0 : index
    %32 = vector.load %arg7[%c0_12, %c0_13] : memref<128x36xbf16, #tpu.memory_space<vmem>>, vector<128x36xbf16>
    %c0_14 = arith.constant 0 : index
    %c0_15 = arith.constant 0 : index
    %33 = vector.load %arg3[%c0_14, %c0_15] : memref<36x8xbf16, #tpu.memory_space<vmem>>, vector<36x8xbf16>
    %cst = arith.constant dense<0.000000e+00> : vector<128x8xf32>
    %34 = tpu.matmul %32, %33, %cst {dimension_numbers = #tpu.dot_dimension_numbers<[1], [0], [0], [1], [0, 0, 1, 1], [], []>} : vector<128x36xbf16>, vector<36x8xbf16>, vector<128x8xf32> -> vector<128x8xf32>
    %cst_16 = arith.constant dense<0.000000e+00> : vector<8xf32>
    %35 = vector.multi_reduction <add>, %34, %cst_16 [0] : vector<128x8xf32> to vector<8xf32>
    %36 = vector.shape_cast %35 : vector<8xf32> to vector<1x1x1x8xf32>
    %c0_17 = arith.constant 0 : index
    %c0_18 = arith.constant 0 : index
    %c0_19 = arith.constant 0 : index
    %c0_20 = arith.constant 0 : index
    %37 = vector.load %arg5[%c0_17, %c0_18, %c0_19, %c0_20] : memref<1x1x1x8xf32, #tpu.memory_space<vmem>>, vector<1x1x1x8xf32>
    tpu.vector_store %arg5[%c0_17, %c0_18, %c0_19, %c0_20], %36 {strides = array<i32>} : memref<1x1x1x8xf32, #tpu.memory_space<vmem>>, vector<1x1x1x8xf32>,
    %38 = arith.mulf %34, %34 : vector<128x8xf32>
    %cst_21 = arith.constant dense<0.000000e+00> : vector<8xf32>
    %39 = vector.multi_reduction <add>, %38, %cst_21 [0] : vector<128x8xf32> to vector<8xf32>
    %40 = vector.shape_cast %39 : vector<8xf32> to vector<1x1x1x8xf32>
    %c0_22 = arith.constant 0 : index
    %c0_23 = arith.constant 0 : index
    %c0_24 = arith.constant 0 : index
    %c0_25 = arith.constant 0 : index
    %41 = vector.load %arg6[%c0_22, %c0_23, %c0_24, %c0_25] : memref<1x1x1x8xf32, #tpu.memory_space<vmem>>, vector<1x1x1x8xf32>
    tpu.vector_store %arg6[%c0_22, %c0_23, %c0_24, %c0_25], %40 {strides = array<i32>} : memref<1x1x1x8xf32, #tpu.memory_space<vmem>>, vector<1x1x1x8xf32>,
    %42 = vector.shape_cast %34 : vector<128x8xf32> to vector<1x128x8xf32>
    %c0_26 = arith.constant 0 : index
    %c0_27 = arith.constant 0 : index
    %c0_28 = arith.constant 0 : index
    %43 = vector.load %arg4[%c0_26, %c0_27, %c0_28] : memref<1x128x8xf32, #tpu.memory_space<vmem>>, vector<1x128x8xf32>
    tpu.vector_store %arg4[%c0_26, %c0_27, %c0_28], %42 {strides = array<i32>} : memref<1x128x8xf32, #tpu.memory_space<vmem>>, vector<1x128x8xf32>,
    return
  }
  func.func @transform_0(%arg0: i32, %arg1: i32) -> (i32, i32, i32, i32) {
    %c0_i32 = arith.constant 0 : i32
    %c0_i32_0 = arith.constant 0 : i32
    %c0_i32_1 = arith.constant 0 : i32
    %c0_i32_2 = arith.constant 0 : i32
    return %arg0, %c0_i32, %c0_i32_0, %c0_i32_1 : i32, i32, i32, i32
  }
  func.func @transform_1(%arg0: i32, %arg1: i32) -> (i32, i32) {
    %c0_i32 = arith.constant 0 : i32
    %c0_i32_0 = arith.constant 0 : i32
    %c0_i32_1 = arith.constant 0 : i32
    return %c0_i32, %c0_i32_0 : i32, i32
  }
  func.func @transform_2(%arg0: i32, %arg1: i32) -> (i32, i32, i32) {
    %c0_i32 = arith.constant 0 : i32
    %c0_i32_0 = arith.constant 0 : i32
    return %arg0, %arg1, %c0_i32 : i32, i32, i32
  }
  func.func @transform_3(%arg0: i32, %arg1: i32) -> (i32, i32, i32, i32) {
    %c0_i32 = arith.constant 0 : i32
    %c0_i32_0 = arith.constant 0 : i32
    %c0_i32_1 = arith.constant 0 : i32
    return %arg0, %arg1, %c0_i32, %c0_i32_0 : i32, i32, i32, i32
  }
  func.func @transform_4(%arg0: i32, %arg1: i32) -> (i32, i32, i32, i32) {
    %c0_i32 = arith.constant 0 : i32
    %c0_i32_0 = arith.constant 0 : i32
    %c0_i32_1 = arith.constant 0 : i32
    return %arg0, %arg1, %c0_i32, %c0_i32_0 : i32, i32, i32, i32
  }
}

module attributes {stable_mosaic.version = 11 : i64} {
  func.func @_bn_silu_kernel(%arg0: i32, %arg1: i32, %arg2: memref<1x8x128xf32, #tpu.memory_space<vmem>>, %arg3: memref<1x1x128xf32, #tpu.memory_space<vmem>>, %arg4: memref<1x1x128xf32, #tpu.memory_space<vmem>>, %arg5: memref<1x8x128xf32, #tpu.memory_space<vmem>>) attributes {dimension_semantics = [#tpu.dimension_semantics<parallel>, #tpu.dimension_semantics<parallel>], iteration_bounds = array<i64: 2, 2>, scalar_prefetch = 0 : i64, scratch_operands = 0 : i64, tpu.core_type = #tpu.core_type<tc>, window_params = [{transform_indices = @transform_0, window_bounds = array<i64: 1, 8, 128>}, {pipeline_mode = #tpu.pipeline_mode<synchronous>, transform_indices = @transform_1, window_bounds = array<i64: 1, 1, 128>}, {pipeline_mode = #tpu.pipeline_mode<synchronous>, transform_indices = @transform_2, window_bounds = array<i64: 1, 1, 128>}, {transform_indices = @transform_3, window_bounds = array<i64: 1, 8, 128>}]} {
    %c0 = arith.constant 0 : index
    %c0_0 = arith.constant 0 : index
    %c0_1 = arith.constant 0 : index
    %0 = vector.load %arg2[%c0, %c0_0, %c0_1] : memref<1x8x128xf32, #tpu.memory_space<vmem>>, vector<1x8x128xf32>
    %c0_2 = arith.constant 0 : index
    %c0_3 = arith.constant 0 : index
    %c0_4 = arith.constant 0 : index
    %1 = vector.load %arg3[%c0_2, %c0_3, %c0_4] : memref<1x1x128xf32, #tpu.memory_space<vmem>>, vector<1x1x128xf32>
    %2 = vector.broadcast %1 : vector<1x1x128xf32> to vector<1x8x128xf32>
    %3 = arith.mulf %0, %2 : vector<1x8x128xf32>
    %c0_5 = arith.constant 0 : index
    %c0_6 = arith.constant 0 : index
    %c0_7 = arith.constant 0 : index
    %4 = vector.load %arg4[%c0_5, %c0_6, %c0_7] : memref<1x1x128xf32, #tpu.memory_space<vmem>>, vector<1x1x128xf32>
    %5 = vector.broadcast %4 : vector<1x1x128xf32> to vector<1x8x128xf32>
    %6 = arith.addf %3, %5 : vector<1x8x128xf32>
    %7 = arith.negf %6 : vector<1x8x128xf32>
    %8 = math.exp %7 : vector<1x8x128xf32>
    %cst = arith.constant 1.000000e+00 : f32
    %9 = vector.broadcast %cst : f32 to vector<1x8x128xf32>
    %10 = arith.addf %9, %8 : vector<1x8x128xf32>
    %11 = arith.divf %9, %10 : vector<1x8x128xf32>
    %12 = arith.mulf %6, %11 : vector<1x8x128xf32>
    %c0_8 = arith.constant 0 : index
    %c0_9 = arith.constant 0 : index
    %c0_10 = arith.constant 0 : index
    %13 = vector.load %arg5[%c0_8, %c0_9, %c0_10] : memref<1x8x128xf32, #tpu.memory_space<vmem>>, vector<1x8x128xf32>
    tpu.vector_store %arg5[%c0_8, %c0_9, %c0_10], %12 {strides = array<i32>} : memref<1x8x128xf32, #tpu.memory_space<vmem>>, vector<1x8x128xf32>,
    return
  }
  func.func @transform_0(%arg0: i32, %arg1: i32) -> (i32, i32, i32) {
    %c0_i32 = arith.constant 0 : i32
    %c0_i32_0 = arith.constant 0 : i32
    return %arg0, %arg1, %c0_i32 : i32, i32, i32
  }
  func.func @transform_1(%arg0: i32, %arg1: i32) -> (i32, i32, i32) {
    %c0_i32 = arith.constant 0 : i32
    %c0_i32_0 = arith.constant 0 : i32
    %c0_i32_1 = arith.constant 0 : i32
    %c0_i32_2 = arith.constant 0 : i32
    return %c0_i32, %c0_i32_0, %c0_i32_1 : i32, i32, i32
  }
  func.func @transform_2(%arg0: i32, %arg1: i32) -> (i32, i32, i32) {
    %c0_i32 = arith.constant 0 : i32
    %c0_i32_0 = arith.constant 0 : i32
    %c0_i32_1 = arith.constant 0 : i32
    %c0_i32_2 = arith.constant 0 : i32
    return %c0_i32, %c0_i32_0, %c0_i32_1 : i32, i32, i32
  }
  func.func @transform_3(%arg0: i32, %arg1: i32) -> (i32, i32, i32) {
    %c0_i32 = arith.constant 0 : i32
    %c0_i32_0 = arith.constant 0 : i32
    return %arg0, %arg1, %c0_i32 : i32, i32, i32
  }
}

</mosaic_0001>

<bundles_post_ra>
// kernel: tile.18
= control target key start
LH: loop header
LB: loop body
LE: loop exit
PB: predicated region body
PF: predicated region fallthrough
CT: control target
= control target key end

     0   :  { %s28_s0 = inlined_call_operand.vmem [shape: f32[8], index: 0, kind: input, shape index: {}]   ;;  %s29_s1 = inlined_call_operand.vmem [shape: f32[16,8], index: 1, kind: output, shape index: {}]  }
   0x1   :  { %v4_v0 = vld [vmem:[%s28_s0] ss:$0 sm:$0xff] }
   0x2   :  { %5 = vst [vmem:[%s29_s1] sm:$0xff] %v4_v0  ;;  %8 = vst [vmem:[%s29_s1 + $0x8] sm:$0xff] %v4_v0 }

// kernel: tile.19
= control target key start
LH: loop header
LB: loop body
LE: loop exit
PB: predicated region body
PF: predicated region fallthrough
CT: control target
= control target key end

     0   :  { %s133_s10 = smov 120   ;;  %s134_s11 = smov 104   ;;  %vm3_vm0 = vcmask 64512   ;;  %vm9_vm1 = vcmask 1048512   ;;  %vm15_vm2 = vcmask 982912   ;;  %vm21_vm3 = vcmask 917312   ;;  %s209_s0 = inlined_call_operand.vmem [shape: f32[16,8], index: 0, kind: input, shape index: {}]   ;;  %s210_s1 = inlined_call_operand.vmem [shape: f32[1,1,128], index: 1, kind: output, shape index: {}]  }
   0x1   :  { %v103_v0 = vld [vmem:[%s209_s0 + $0xf] sm:$0x1]   ;;  %v105_v1 = vld [vmem:[%s209_s0 + $0xd] sm:$0x1]   ;;  %v104_v2 = vld [vmem:[%s209_s0 + $0xe] sm:$0x1]  }
   0x2   :  { %7 = vrot.lane.b32.xlu0 %v103_v0, %s133_s10  ;;  %19 = vrot.lane.b32.xlu1 %v105_v1, %s134_s11  ;;  %v106_v3 = vld [vmem:[%s209_s0 + $0xc] sm:$0x1]   ;;  %s135_s16 = smov 112   ;;  %s136_s17 = smov 96   ;;  %v107_v4 = vld [vmem:[%s209_s0 + $0xb] sm:$0x1]  }
   0x3   :  { %v108_v5 = vld [vmem:[%s209_s0 + $0xa] sm:$0x1]   ;;  %v2_v6 = vld [vmem:[%s209_s0] sm:$0x1]   ;;  %s137_s24 = smov 88   ;;  %s138_s25 = smov 80  }
   0x4   :  { %4 = vst.msk [vmem:[#allocation0] sm:$0x1] %vm3_vm0, %v2_v6   ;;  %v109_v7 = vld [vmem:[%s209_s0 + $0x9] sm:$0x1]   ;;  %v110_v8 = vld [vmem:[%s209_s0 + $0x8] sm:$0x1]  }
   0x5   :  { %s139_s30 = smov 72   ;;  %s140_s2 = smov 64   ;;  %v111_v9 = vld [vmem:[%s209_s0 + $0x7] sm:$0x1]   ;;  %v112_v10 = vld [vmem:[%s209_s0 + $0x6] sm:$0x1]  }
   0x6   :  { %13 = vrot.lane.b32.xlu0 %v104_v2, %s135_s16  ;;  %25 = vrot.lane.b32.xlu1 %v106_v3, %s136_s17  ;;  %s141_s7 = smov 56   ;;  %s142_s8 = smov 48   ;;  %v113_v11 = vld [vmem:[%s209_s0 + $0x5] sm:$0x1]   ;;  %v114_v12 = vld [vmem:[%s209_s0 + $0x4] sm:$0x1]  }
   0x7   :  { %s143_s13 = smov 40   ;;  %s144_s14 = smov 32   ;;  %v115_v13 = vld [vmem:[%s209_s0 + $0x3] sm:$0x1]   ;;  %v116_v14 = vld [vmem:[%s209_s0 + $0x2] sm:$0x1]  }
   0x8   :  { %s145_s19 = smov 24   ;;  %s146_s20 = smov 16   ;;  %v117_v15 = vld [vmem:[%s209_s0 + $0x1] sm:$0x1]   ;;  %vm27_vm4 = vcmask 851712   ;;  %vm33_vm5 = vcmask 786112  }
   0x9   :  { %s147_s0 = smov 8   ;;  %vm39_vm6 = vcmask 720512   ;;  %vm45_vm7 = vcmask 654912   ;;  %vm51_vm8 = vcmask 589312   ;;  %vm57_vm9 = vcmask 523712  }
   0xa   :  { %31 = vrot.lane.b32.xlu0 %v107_v4, %s137_s24  ;;  %37 = vrot.lane.b32.xlu1 %v108_v5, %s138_s25  ;;  %vm63_vm10 = vcmask 458112   ;;  %vm69_vm11 = vcmask 392512   ;;  %vm75_vm12 = vcmask 326912   ;;  %vm81_vm13 = vcmask 261312  }
   0xb   :  { %vm87_vm14 = vcmask 195712   ;;  %vm93_vm15 = vcmask 130112  }
   0xe   :  { %43 = vrot.lane.b32.xlu0 %v109_v7, %s139_s30  ;;  %49 = vrot.lane.b32.xlu1 %v110_v8, %s140_s2 }
  0x12   :  { %55 = vrot.lane.b32.xlu0 %v111_v9, %s141_s7  ;;  %61 = vrot.lane.b32.xlu1 %v112_v10, %s142_s8 }
  0x16   :  { %67 = vrot.lane.b32.xlu0 %v113_v11, %s143_s13  ;;  %73 = vrot.lane.b32.xlu1 %v114_v12, %s144_s14 }
  0x1a   :  { %79 = vrot.lane.b32.xlu0 %v115_v13, %s145_s19  ;;  %85 = vrot.lane.b32.xlu1 %v116_v14, %s146_s20 }
  0x1e   :  { %91 = vrot.lane.b32.xlu0 %v117_v15, %s147_s0 }
  0x74   :  { %v8_v16 = vpop.permute.xlu0 %7   ;;  %v20_v17 = vpop.permute.xlu1 %19  }
  0x75   :  { %10 = vst.msk [vmem:[#allocation0] sm:$0x1] %vm9_vm1, %v8_v16  }
  0x78   :  { %v14_v18 = vpop.permute.xlu0 %13   ;;  %v26_v19 = vpop.permute.xlu1 %25  }
  0x79   :  { %16 = vst.msk [vmem:[#allocation0] sm:$0x1] %vm15_vm2, %v14_v18  }
  0x7a   :  { %22 = vst.msk [vmem:[#allocation0] sm:$0x1] %vm21_vm3, %v20_v17  }
  0x7b   :  { %28 = vst.msk [vmem:[#allocation0] sm:$0x1] %vm27_vm4, %v26_v19  }
  0x7c   :  { %v32_v20 = vpop.permute.xlu0 %31   ;;  %v38_v21 = vpop.permute.xlu1 %37  }
  0x7d   :  { %34 = vst.msk [vmem:[#allocation0] sm:$0x1] %vm33_vm5, %v32_v20  }
  0x7e   :  { %40 = vst.msk [vmem:[#allocation0] sm:$0x1] %vm39_vm6, %v38_v21  }
  0x80   :  { %v44_v22 = vpop.permute.xlu0 %43   ;;  %v50_v23 = vpop.permute.xlu1 %49  }
  0x81   :  { %46 = vst.msk [vmem:[#allocation0] sm:$0x1] %vm45_vm7, %v44_v22  }
  0x82   :  { %52 = vst.msk [vmem:[#allocation0] sm:$0x1] %vm51_vm8, %v50_v23  }
  0x84   :  { %v56_v24 = vpop.permute.xlu0 %55   ;;  %v62_v25 = vpop.permute.xlu1 %61  }
  0x85   :  { %58 = vst.msk [vmem:[#allocation0] sm:$0x1] %vm57_vm9, %v56_v24  }
  0x86   :  { %64 = vst.msk [vmem:[#allocation0] sm:$0x1] %vm63_vm10, %v62_v25  }
  0x88   :  { %v68_v26 = vpop.permute.xlu0 %67   ;;  %v74_v27 = vpop.permute.xlu1 %73  }
  0x89   :  { %70 = vst.msk [vmem:[#allocation0] sm:$0x1] %vm69_vm11, %v68_v26  }
  0x8a   :  { %76 = vst.msk [vmem:[#allocation0] sm:$0x1] %vm75_vm12, %v74_v27  }
  0x8c   :  { %v80_v28 = vpop.permute.xlu0 %79   ;;  %v86_v29 = vpop.permute.xlu1 %85  }
  0x8d   :  { %82 = vst.msk [vmem:[#allocation0] sm:$0x1] %vm81_vm13, %v80_v28  }
  0x8e   :  { %88 = vst.msk [vmem:[#allocation0] sm:$0x1] %vm87_vm14, %v86_v29  }
  0x90   :  { %v92_v30 = vpop.permute.xlu0 %91  }
  0x91   :  { %94 = vst.msk [vmem:[#allocation0] sm:$0x1] %vm93_vm15, %v92_v30  }
  0x98   :  { %v99_v31 = vld [vmem:[#allocation0] sm:$0x1] }
  0x99   :  { %102 = vst [vmem:[%s210_s1] sm:$0x1] %v99_v31 }

// kernel: base_conv_with_mask.3
= control target key start
LH: loop header
LB: loop body
LE: loop exit
PB: predicated region body
PF: predicated region fallthrough
CT: control target
= control target key end

     0   :  { %s431_s12 = smov 0   ;;  %s433_s13 = smov 0   ;;  %s488_s0 = inlined_call_operand.vmem [shape: f32[2,16,128], index: 0, kind: input, shape index: {}]   ;;  %s489_s1 = inlined_call_operand.vmem [shape: f32[1,1,128], index: 1, kind: input, shape index: {}]   ;;  %s490_s2 = inlined_call_operand.vmem [shape: f32[1,1,128], index: 2, kind: input, shape index: {}]   ;;  %s491_s3 = inlined_call_operand.vmem [shape: f32[2,16,128], index: 3, kind: output, shape index: {}]  }
   0x1   :  { %s435_s14 = smov 0   ;;  %s437_s15 = smov 0  }
   0x2   :  { %s439_s16 = smov 0  }
   0x3 LB: > { %s22_s17 = sadd.s32 1, %s401_s14  ;;  %s25_s18 = sadd.s32 1, %s405_s15  ;;  %s409_s16 = sphi %s439_s16, %s13_s16   ;;  %s405_s15 = sphi %s437_s15, %s495_s15   ;;  %s401_s14 = sphi %s435_s14, %s494_s14   ;;  %s397_s13 = sphi %s433_s13, %s493_s13   ;;  %s393_s12 = sphi %s431_s12, %s492_s12  }
   0x4   : > { %p23_p0 = scmp.ge.s32.totalorder %s22_s17, 2  ;;  %p317_p1 = scmp.ge.s32.totalorder %s409_s16, 1 }
   0x5   : > { %p156_p2 = scmp.lt.s32.totalorder %s409_s16, 5 }
   0x6   : > { %s497_s17 = smov (%p23_p0, %s22_s17), 0  ;;  %s499_s18 = smov (!%p23_p0, %s25_s18), %s405_s15 }
   0x7   : > { %p157_p3 = pnand %p317_p1, %p156_p2  ;;  %p27_p4 = scmp.ge.s32.totalorder %s499_s18, 2 }
   0x8   : > { %p186_p5 = scmp.lt.s32.totalorder (!%p157_p3), %s397_s13, 1  ;;  %p188_p6 = scmp.lt.s32.totalorder (!%p157_p3), %s393_s12, 1 }
   0x9   : > { %s501_s18 = smov (%p27_p4, %s499_s18), 0  ;;  %160 = sbr.rel (%p157_p3) target bundleno = 59 (0x3b), region = 32 }
   0xe   : > { %s503_s13 = smov (!%p186_p5, %s397_s13), 1  ;;  %s505_s12 = smov (!%p188_p6, %s393_s12), 1  ;;  %v322_v0 = vld [vmem:[%s489_s1] ss:$0 sm:$0xff] }
   0xf   : > { %s318_s19 = sshll.u32 %s503_s13, 1  ;;  %v323_v2 = vld [vmem:[%s490_s2] ss:$0 sm:$0xff] }
  0x10   : > { %s191_s20 = sadd.s32 %s318_s19, %s505_s12 }
  0x11   : > { %s319_s21 = sshll.u32 %s191_s20, 3 }
  0x12   : > { %s193_s26 = scalar_lea.vmem %s488_s0, %s319_s21  ;;  %s201_s4 = scalar_lea.vmem %s491_s3, %s319_s21 }
  0x13   : > { %v202_v1 = vld [vmem:[%s193_s26] sm:$0xff] }
  0x14   : > { %v210_v3 = vmul.f32 %v322_v0, %v202_v1 }
  0x16   : > { %v218_v4 = vadd.f32 %v323_v2, %v210_v3 }
  0x18   : > { %v324_v5 = vmul.f32 -1.442695, %v218_v4 }
  0x1a   : > { %367 = vpow2.f32 %v324_v5 }
  0x27   : > { %v368_v6 = vpop.eup %367 }
  0x28   : > { %v222_v7 = vadd.f32 1.0, %v368_v6 }
  0x2a   : > { %369 = vrcp.f32 %v222_v7 }
  0x37   : > { %v370_v8 = vpop.eup %369 }
  0x38   : > { %v225_v9 = vmul.f32 %v370_v8, %v218_v4 }
  0x3a   : > { %226 = vst [vmem:[%s201_s4] sm:$0xff] %v225_v9 }
  0x3b PF: > { %s13_s16 = sadd.s32 1, %s409_s16   ;;  %s492_s12 = smov %s401_s14 }
  0x3c   : > { %p10_p7 = scmp.ge.s32.totalorder %s13_s16, 6   ;;  %s493_s13 = smov %s405_s15 }
  0x3d   : > { %s494_s14 = smov %s497_s17  ;;  %s495_s15 = smov %s501_s18 }
  0x3e   :  { %12 = sbr.rel (!%p10_p7) target bundleno = 3 (0x3), region = 62 }

// kernel: base_conv_with_mask.2
= control target key start
LH: loop header
LB: loop body
LE: loop exit
PB: predicated region body
PF: predicated region fallthrough
CT: control target
= control target key end

     0   :  { %s1876_s15 = smov 0   ;;  %s1878_s16 = smov 0   ;;  %s2641_s0 = inlined_call_operand.vmem [shape: bf16[2,18,18,4], index: 0, kind: input, shape index: {}]   ;;  %s2642_s1 = inlined_call_operand.vmem [shape: bf16[36,8], index: 1, kind: input, shape index: {}]   ;;  %s2643_s2 = inlined_call_operand.vmem [shape: f32[2,256,8], index: 2, kind: output, shape index: {0}]   ;;  %s2644_s3 = inlined_call_operand.vmem [shape: f32[2,2,1,8], index: 3, kind: output, shape index: {1}]   ;;  %s2645_s4 = inlined_call_operand.vmem [shape: f32[2,2,1,8], index: 4, kind: output, shape index: {2}]  }
   0x1   :  { %s1880_s17 = smov 0   ;;  %s1882_s18 = smov 0  }
   0x2   :  { %s1884_s19 = smov 0  }
   0x3 LB: > { %s24_s20 = sadd.s32 1, %s1833_s17  ;;  %s27_s21 = sadd.s32 1, %s1837_s18  ;;  %s1841_s19 = sphi %s1884_s19, %s15_s19   ;;  %s1837_s18 = sphi %s1882_s18, %s2653_s18   ;;  %s1833_s17 = sphi %s1880_s17, %s2652_s17   ;;  %s1829_s16 = sphi %s1878_s16, %s2651_s16   ;;  %s1825_s15 = sphi %s1876_s15, %s2650_s15  }
   0x4   : > { %p25_p0 = scmp.ge.s32.totalorder %s24_s20, 2  ;;  %p1660_p1 = scmp.ge.s32.totalorder %s1841_s19, 1 }
   0x5   : > { %p185_p2 = scmp.lt.s32.totalorder %s1841_s19, 5 }
   0x6   : > { %s2655_s20 = smov (%p25_p0, %s24_s20), 0  ;;  %s2657_s21 = smov (!%p25_p0, %s27_s21), %s1837_s18 }
   0x7   : > { %p186_p3 = pnand %p1660_p1, %p185_p2  ;;  %p29_p4 = scmp.ge.s32.totalorder %s2657_s21, 2 }
   0x8   : > { %p229_p5 = scmp.lt.s32.totalorder (!%p186_p3), %s1829_s16, 1  ;;  %s1701_s22 = smul.u32 (!%p186_p3), 96, %s1825_s15 }
   0x9   : > { %s2659_s21 = smov (%p29_p4, %s2657_s21), 0  ;;  %189 = sbr.rel (%p186_p3) target bundleno = 620 (0x26c), region = 28 }
   0xa   : > { %s1843_s28 = smov (!%p186_p3), 12   ;;  %s1844_s29 = smov (!%p186_p3), 8  }
   0xb   : > { %s1845_s30 = smov (!%p186_p3), 4   ;;  %s1846_s5 = smov (!%p186_p3), 16  }
   0xc   : > { %s1847_s6 = smov (!%p186_p3), 20   ;;  %s1848_s7 = smov (!%p186_p3), 24  }
   0xd   : > { %s1849_s8 = smov (!%p186_p3), 28   ;;  %s1850_s13 = smov (!%p186_p3), 32  }
   0xe   : > { %s2661_s16 = smov (!%p229_p5, %s1829_s16), 1  ;;  %vm594_vm0 = vcmask 1042432   ;;  %vm595_vm1 = vcmask 1046532   ;;  %vm310_vm2 = vsmask.f32 3328  ;;  %vm293_vm4 = vcmask 27648  }
   0xf   : > { %s1743_s23 = smul.u32 216, %s2661_s16  ;;  %vm311_vm3 = vsmask.f32 7440  ;;  %vm1923_vm5 = vmor %vm594_vm0, %vm595_vm1  ;;  %vm1277_vm7 = vcmask 1041408   ;;  %vm553_vm8 = vcmask 60448   ;;  %vm701_vm9 = vcmask 93248  }
  0x10   : > { %vm1972_vm6 = vmor %vm310_vm2, %vm311_vm3  ;;  %vm768_vm10 = vcmask 126048   ;;  %vm857_vm11 = vcmask 158848   ;;  %vm930_vm12 = vcmask 191648   ;;  %vm997_vm13 = vcmask 224448   ;;  %s1663_s24 = sshll.u32 %s2661_s16, 5  ;;  %p246_p7 = scmp.lt.s32.totalorder %s1825_s15, 1 }
  0x11   : > { %s233_s26 = scalar_lea.vmem %s2641_s0, %s1743_s23  ;;  %vm1086_vm14 = vcmask 257248   ;;  %vm1159_vm15 = vcmask 290048   ;;  %vm1252_vm0 = vcmask 293888   ;;  %s1662_s23 = sshll.u32 %s1825_s15, 4  ;;  %vm1378_vm1 = vcmask 64512  }
  0x12   : > { %s1915_s27 = scalar_lea.vmem %s233_s26, %s1701_s22  ;;  %p237_p6 = scmp.lt.s32.totalorder %s1662_s23, 31  ;;  %vm1416_vm2 = vcmask 57344  }
  0x13   : > { %v266_v0 = vld [vmem:[%s1915_s27 + $0xc] sm:$0xf]  ;;  %v267_v1 = vld [vmem:[%s1915_s27 + $0x10] sm:$0xf]  ;;  %v263_v2 = vld [vmem:[%s1915_s27] sm:$0xf] }
  0x14   : > { %720 = vrot.lane.b32.xlu0 %v266_v0, %s1843_s28  ;;  %722 = vrot.lane.b32.xlu1 %v267_v1, %s1843_s28  ;;  %v264_v3 = vld [vmem:[%s1915_s27 + $0x4] sm:$0xf]  ;;  %v1670_v5 = vrot.slane %v263_v2, 9  ;;  %v265_v6 = vld [vmem:[%s1915_s27 + $0x8] sm:$0x1]  ;;  %v1671_v7 = vrot.slane %v266_v0, 9 }
  0x15   : > { %294 = vst.msk [vmem:[#allocation2] sm:$0xf] %vm293_vm4, %v263_v2  ;;  %296 = vst.msk [vmem:[#allocation2 + $0x8] sm:$0xf] %vm293_vm4, %v266_v0  ;;  %v599_v8 = vrot.slane %v264_v3, 5  ;;  %v602_v9 = vrot.slane %v265_v6, 5 }
  0x16   : > { %297 = vst.msk [vmem:[#allocation2 + $0xc] sm:$0xf] %vm293_vm4, %v267_v1  ;;  %v606_v10 = vrot.slane %v267_v1, 5  ;;  %v268_v11 = vld [vmem:[%s1915_s27 + $0x14] sm:$0x1]  ;;  %v314_v12 = vshrl.u32 %v263_v2, 16 }
  0x17   : > { %295 = vst.msk [vmem:[#allocation2 + $0x4] sm:$0xf] %vm293_vm4, %v264_v3  ;;  %v317_v13 = vshll.u32 %v263_v2, 16  ;;  %v323_v14 = vshll.u32 %v264_v3, 16  ;;  %v338_v15 = vshrl.u32 %v266_v0, 16  ;;  %v600_v17 = vsel %vm1923_vm5, %v1670_v5, %v599_v8  ;;  %s2663_s23 = smov (!%p237_p6, %s1662_s23), 31 }
  0x18   : > { %v1934_v16 = vld [vmem:[%s1915_s27 + $0x1c] sm:$0xf]  ;;  %v601_v18 = vrot.slane %v599_v8, 4  ;;  %v608_v19 = vrot.slane %v606_v10, 4  ;;  %v609_v20 = vrot.slane %v268_v11, 5  ;;  %653 = vrot.lane.b32.xlu0 %v600_v17, %s1844_s29  ;;  %v1946_v22 = vsel %vm1923_vm5, %v1671_v7, %v606_v10  ;;  %s240_s25 = sadd.s32 %s1663_s24, %s2663_s23  ;;  %s2665_s15 = smov (!%p246_p7, %s1825_s15), 1 }
  0x19   : > { %v1939_v21 = vld [vmem:[%s1915_s27 + $0x18] sm:$0xf]  ;;  %299 = vst.msk [vmem:[#allocation2 + $0x14] sm:$0xf] %vm293_vm4, %v1934_v16  ;;  %v316_v23 = vrot.slane %v314_v12, 4  ;;  %v319_v24 = vrot.slane %v317_v13, 5 }
  0x1a   : > { %v325_v25 = vrot.slane %v323_v14, 5  ;;  %v1949_v26 = vld [vmem:[%s1915_s27 + $0x28] sm:$0xf]  ;;  %298 = vst.msk [vmem:[#allocation2 + $0x10] sm:$0xf] %vm293_vm4, %v1939_v21  ;;  %v603_v27 = vsel %vm1923_vm5, %v601_v18, %v602_v9  ;;  %v340_v28 = vrot.slane %v338_v15, 4  ;;  %v1968_v37 = vsel %vm1923_vm5, %v608_v19, %v609_v20 }
  0x1b   : > { %v341_v29 = vshll.u32 %v266_v0, 16  ;;  %v347_v30 = vshll.u32 %v267_v1, 16  ;;  %v1956_v31 = vld [vmem:[%s1915_s27 + $0x24] sm:$0xf]  ;;  %301 = vst.msk [vmem:[#allocation2 + $0x1c] sm:$0xf] %vm293_vm4, %v1949_v26  ;;  %655 = vrot.lane.b32.xlu1 %v603_v27, %s1844_s29  ;;  %v320_v32 = vor.u32 %v319_v24, %v316_v23 }
  0x1c   : > { %v327_v33 = vshrl.u32 %v264_v3, 16  ;;  %v333_v34 = vshll.u32 %v265_v6, 16  ;;  %v351_v35 = vshrl.u32 %v267_v1, 16  ;;  %v1962_v36 = vld [vmem:[%s1915_s27 + $0x34] sm:$0xf]  ;;  %v357_v41 = vshll.u32 %v268_v11, 16  ;;  %657 = vrot.lane.b32.xlu0 %v1946_v22, %s1844_s29 }
  0x1d   : > { %300 = vst.msk [vmem:[#allocation2 + $0x18] sm:$0xf] %vm293_vm4, %v1956_v31  ;;  %v343_v39 = vrot.slane %v341_v29, 5  ;;  %v349_v40 = vrot.slane %v347_v30, 5  ;;  %v1977_v42 = vld [vmem:[%s1915_s27 + $0x30] sm:$0xf] }
  0x1e   : > { %303 = vst.msk [vmem:[#allocation2 + $0x24] sm:$0xf] %vm293_vm4, %v1962_v36  ;;  %v321_v43 = vrot.slane %v320_v32, 4  ;;  %v329_v44 = vrot.slane %v327_v33, 4  ;;  %v353_v45 = vrot.slane %v351_v35, 4  ;;  %v335_v47 = vrot.slane %v333_v34, 5 }
  0x1f   : > { %302 = vst.msk [vmem:[#allocation2 + $0x20] sm:$0xf] %vm293_vm4, %v1977_v42  ;;  %v344_v46 = vor.u32 %v343_v39, %v340_v28  ;;  %v371_v48 = vshll.u32 %v1934_v16, 16  ;;  %v1987_v49 = vld [vmem:[%s1915_s27 + $0x40] sm:$0xf]  ;;  %659 = vrot.lane.b32.xlu1 %v1968_v37, %s1844_s29  ;;  %v359_v53 = vrot.slane %v357_v41, 5 }
  0x20   : > { %v326_v50 = vsel %vm1972_vm6, %v321_v43, %v325_v25  ;;  %v330_v51 = vor.u32 %v329_v44, %v325_v25  ;;  %v354_v52 = vor.u32 %v353_v45, %v349_v40  ;;  %v1994_v54 = vld [vmem:[%s1915_s27 + $0x3c] sm:$0xf]  ;;  %305 = vst.msk [vmem:[#allocation2 + $0x2c] sm:$0xf] %vm293_vm4, %v1987_v49  ;;  %v375_v56 = vshrl.u32 %v1934_v16, 16  ;;  %s1664_s26 = sshll.u32 %s240_s25, 3 }
  0x21   : > { %v345_v55 = vrot.slane %v344_v46, 4  ;;  %v362_v57 = vshrl.u32 %v1939_v21, 16  ;;  %v365_v58 = vshll.u32 %v1939_v21, 16  ;;  %304 = vst.msk [vmem:[#allocation2 + $0x28] sm:$0xf] %vm293_vm4, %v1994_v54  ;;  %505 = vrot.lane.b32.xlu0 %v326_v50, %s1845_s30  ;;  %v373_v2 = vrot.slane %v371_v48, 5 }
  0x22   : > { %v331_v59 = vrot.slane %v330_v51, 4  ;;  %v355_v60 = vrot.slane %v354_v52, 4  ;;  %v377_v3 = vrot.slane %v375_v56, 4  ;;  %v271_v5 = vld [vmem:[%s1915_s27 + $0x20] sm:$0x1]  ;;  %v613_v17 = vrot.slane %v1934_v16, 5 }
  0x23   : > { %v350_v61 = vsel %vm1972_vm6, %v345_v55, %v349_v40  ;;  %v364_v62 = vrot.slane %v362_v57, 4  ;;  %v367_v63 = vrot.slane %v365_v58, 5  ;;  %v381_v8 = vshll.u32 %v271_v5, 16  ;;  %v2017_v9 = vld [vmem:[%s1915_s27 + $0x4c] sm:$0xf]  ;;  %v1795_v51 = vld [vmem:[%s2642_s1] sm:$0xff]  }
  0x24   : > { %509 = vrot.lane.b32.xlu1 %v350_v61, %s1845_s30  ;;  %v336_v0 = vsel %vm1972_vm6, %v331_v59, %v335_v47  ;;  %v360_v1 = vsel %vm1972_vm6, %v355_v60, %v359_v53  ;;  %v378_v7 = vor.u32 %v377_v3, %v373_v2  ;;  %307 = vst.msk [vmem:[#allocation2 + $0x34] sm:$0xf] %vm293_vm4, %v2017_v9  ;;  %v2022_v11 = vld [vmem:[%s1915_s27 + $0x48] sm:$0xf]  ;;  %v1672_v18 = vrot.slane %v1939_v21, 9 }
  0x25   : > { %507 = vrot.lane.b32.xlu0 %v336_v0, %s1845_s30  ;;  %v368_v6 = vor.u32 %v367_v63, %v364_v62  ;;  %306 = vst.msk [vmem:[#allocation2 + $0x30] sm:$0xf] %vm293_vm4, %v2022_v11  ;;  %v383_v13 = vrot.slane %v381_v8, 5  ;;  %v615_v19 = vrot.slane %v613_v17, 4  ;;  %v616_v20 = vrot.slane %v271_v5, 5  ;;  %v1793_v48 = vld [vmem:[%s2642_s1 + $0x8] sm:$0xff]  }
  0x26   : > { %v379_v12 = vrot.slane %v378_v7, 4  ;;  %v2048_v23 = vsel %vm1923_vm5, %v1672_v18, %v613_v17  ;;  %v386_v24 = vshrl.u32 %v1956_v31, 16  ;;  %v389_v25 = vshll.u32 %v1956_v31, 16  ;;  %v274_v34 = vld [vmem:[%s1915_s27 + $0x2c] sm:$0x1] }
  0x27   : > { %v369_v10 = vrot.slane %v368_v6, 4  ;;  %v2056_v27 = vsel %vm1923_vm5, %v615_v19, %v616_v20  ;;  %v395_v28 = vshll.u32 %v1949_v26, 16  ;;  %v405_v39 = vshll.u32 %v274_v34, 16  ;;  %v2072_v40 = vld [vmem:[%s1915_s27 + $0x58] sm:$0xf] }
  0x28   : > { %511 = vrot.lane.b32.xlu1 %v360_v1, %s1845_s30  ;;  %v2036_v15 = vsel %vm1972_vm6, %v379_v12, %v383_v13  ;;  %v388_v29 = vrot.slane %v386_v24, 4  ;;  %v391_v30 = vrot.slane %v389_v25, 5  ;;  %v2075_v41 = vld [vmem:[%s1915_s27 + $0x54] sm:$0xf]  ;;  %309 = vst.msk [vmem:[#allocation2 + $0x3c] sm:$0xf] %vm293_vm4, %v2072_v40 }
  0x29   : > { %724 = vrot.lane.b32.xlu0 %v1939_v21, %s1843_s28  ;;  %v2031_v14 = vsel %vm1972_vm6, %v369_v10, %v373_v2  ;;  %v397_v32 = vrot.slane %v395_v28, 5  ;;  %308 = vst.msk [vmem:[#allocation2 + $0x38] sm:$0xf] %vm293_vm4, %v2075_v41  ;;  %v1792_v44 = vld [vmem:[%s2642_s1 + $0x10] ss:$0 sps:$4 sm:$0x33]  }
  0x2a   : > { %v392_v35 = vor.u32 %v391_v30, %v388_v29  ;;  %1741 = vmatprep.subr.msk.bf16.mxu0 %vm1277_vm7, %v1792_v44  ;;  %v1279_v46 = vsel %vm1277_vm7, %v1792_v44, 0  ;;  %1742 = vmatprep.subr.msk.bf16.mxu1 %vm1277_vm7, %v1792_v44  ;;  %v620_v50 = vrot.slane %v1949_v26, 5  ;;  %v1673_v52 = vrot.slane %v1956_v31, 9  ;;  %v277_v2 = vld [vmem:[%s1915_s27 + $0x38] sm:$0x1] }
  0x2b   : > { %1714 = vmatpush3.bf16.msra.mxu0 %v1279_v46  ;;  %1738 = vmatpush3.bf16.msra.mxu1 %v1279_v46  ;;  %v623_v55 = vrot.slane %v274_v34, 5  ;;  %v410_v58 = vshrl.u32 %v1977_v42, 16  ;;  %v413_v59 = vshll.u32 %v1977_v42, 16  ;;  %v419_v60 = vshll.u32 %v1962_v36, 16  ;;  %v280_v29 = vld [vmem:[%s1915_s27 + $0x44] sm:$0x1] }
  0x2c   : > { %726 = vrot.lane.b32.xlu1 %v1934_v16, %s1843_s28  ;;  %v393_v43 = vrot.slane %v392_v35, 4  ;;  %1715 = vmatprep.subr.bf16.mxu0 %v1793_v48  ;;  %v622_v53 = vrot.slane %v620_v50, 4  ;;  %v621_v56 = vsel %vm1923_vm5, %v1673_v52, %v620_v50  ;;  %v429_v6 = vshll.u32 %v277_v2, 16 }
  0x2d   : > { %809 = vrot.lane.b32.xlu0 %v350_v61, %s1846_s5  ;;  %1736 = vmatprep.subr.bf16.mxu1 %v1793_v48  ;;  %v423_v61 = vshrl.u32 %v1962_v36, 16  ;;  %v412_v62 = vrot.slane %v410_v58, 4  ;;  %v415_v63 = vrot.slane %v413_v59, 5  ;;  %v421_v0 = vrot.slane %v419_v60, 5 }
  0x2e   : > { %v398_v45 = vsel %vm1972_vm6, %v393_v43, %v397_v32  ;;  %v624_v57 = vsel %vm1923_vm5, %v622_v53, %v623_v55  ;;  %v431_v10 = vrot.slane %v429_v6, 5  ;;  %v627_v12 = vrot.slane %v1962_v36, 5 }
  0x2f   : > { %1716 = vmatpush3.bf16.msra.mxu0 %v1793_v48  ;;  %1739 = vmatpush3.bf16.msra.mxu1 %v1793_v48  ;;  %v416_v3 = vor.u32 %v415_v63, %v412_v62  ;;  %v1674_v13 = vrot.slane %v1977_v42, 9  ;;  %v434_v18 = vshrl.u32 %v1994_v54, 16  ;;  %v437_v19 = vshll.u32 %v1994_v54, 16 }
  0x30   : > { %811 = vrot.lane.b32.xlu1 %v360_v1, %s1846_s5  ;;  %1717 = vmatprep.subr.bf16.mxu0 %v1795_v51  ;;  %v425_v1 = vrot.slane %v423_v61, 4  ;;  %v447_v24 = vshrl.u32 %v1987_v49, 16  ;;  %v637_v48 = vrot.slane %v280_v29, 5  ;;  %v458_v60 = vshrl.u32 %v2022_v11, 16 }
  0x31   : > { %813 = vrot.lane.b32.xlu0 %v2031_v14, %s1846_s5  ;;  %1737 = vmatprep.subr.bf16.mxu1 %v1795_v51  ;;  %v417_v7 = vrot.slane %v416_v3, 4  ;;  %v2152_v17 = vsel %vm1923_vm5, %v1674_v13, %v627_v12  ;;  %v436_v25 = vrot.slane %v434_v18, 4  ;;  %v461_v61 = vshll.u32 %v2022_v11, 16 }
  0x32   : > { %v426_v5 = vor.u32 %v425_v1, %v421_v0  ;;  %v467_v63 = vshll.u32 %v2017_v9, 16 }
  0x33   : > { %1718 = vmatpush3.bf16.msra.mxu0 %v1795_v51  ;;  %1740 = vmatpush3.bf16.msra.mxu1 %v1795_v51  ;;  %v463_v3 = vrot.slane %v461_v61, 5 }
  0x34   : > { %815 = vrot.lane.b32.xlu1 %v2036_v15, %s1846_s5  ;;  %v427_v8 = vrot.slane %v426_v5, 4  ;;  %v469_v6 = vrot.slane %v467_v63, 5 }
  0x35   : > { %882 = vrot.lane.b32.xlu0 %v1946_v22, %s1847_s6  ;;  %v399_v22 = vshrl.u32 %v1949_v26, 16 }
  0x37   : > { %v401_v33 = vrot.slane %v399_v22, 4  ;;  %v449_v22 = vrot.slane %v447_v24, 4  ;;  %v641_v24 = vrot.slane %v2017_v9, 5 }
  0x38   : > { %884 = vrot.lane.b32.xlu1 %v1968_v37, %s1847_s6 }
  0x39   : > { %886 = vrot.lane.b32.xlu0 %v2048_v23, %s1847_s6  ;;  %v402_v37 = vor.u32 %v401_v33, %v397_v32  ;;  %v453_v33 = vshll.u32 %v280_v29, 16 }
  0x3c   : > { %888 = vrot.lane.b32.xlu1 %v2056_v27, %s1847_s6 }
  0x3d   : > { %949 = vrot.lane.b32.xlu0 %v1939_v21, %s1848_s7  ;;  %v407_v21 = vrot.slane %v405_v39, 5 }
  0x40   : > { %951 = vrot.lane.b32.xlu1 %v1934_v16, %s1848_s7  ;;  %v403_v16 = vrot.slane %v402_v37, 4  ;;  %v455_v37 = vrot.slane %v453_v33, 5  ;;  %v482_v33 = vshrl.u32 %v2075_v41, 16 }
  0x41   : > { %953 = vrot.lane.b32.xlu0 %v1956_v31, %s1848_s7 }
  0x42   : > { %v408_v47 = vsel %vm1972_vm6, %v403_v16, %v407_v21  ;;  %v634_v21 = vrot.slane %v1987_v49, 5 }
  0x44   : > { %955 = vrot.lane.b32.xlu1 %v1949_v26, %s1848_s7 }
  0x45   : > { %1038 = vrot.lane.b32.xlu0 %v2031_v14, %s1849_s8 }
  0x48   : > { %1040 = vrot.lane.b32.xlu1 %v2036_v15, %s1849_s8 }
  0x49   : > { %1042 = vrot.lane.b32.xlu0 %v398_v45, %s1849_s8 }
  0x4c   : > { %1044 = vrot.lane.b32.xlu1 %v408_v47, %s1849_s8 }
  0x4d   : > { %1111 = vrot.lane.b32.xlu0 %v2048_v23, %s1850_s13 }
  0x50   : > { %1113 = vrot.lane.b32.xlu1 %v2056_v27, %s1850_s13 }
  0x51   : > { %513 = vrot.lane.b32.xlu0 %v2031_v14, %s1845_s30  ;;  %v629_v14 = vrot.slane %v627_v12, 4 }
  0x54   : > { %515 = vrot.lane.b32.xlu1 %v2036_v15, %s1845_s30  ;;  %v630_v15 = vrot.slane %v277_v2, 5  ;;  %v460_v2 = vrot.slane %v458_v60, 4 }
  0x55   : > { %1115 = vrot.lane.b32.xlu0 %v621_v56, %s1850_s13 }
  0x56   : > { %v2159_v20 = vsel %vm1923_vm5, %v629_v14, %v630_v15 }
  0x58   : > { %1117 = vrot.lane.b32.xlu1 %v624_v57, %s1850_s13 }
  0x59   : > { %517 = vrot.lane.b32.xlu0 %v398_v45, %s1845_s30 }
  0x5c   : > { %519 = vrot.lane.b32.xlu1 %v408_v47, %s1845_s30 }
  0x5d   : > { %661 = vrot.lane.b32.xlu0 %v2048_v23, %s1844_s29  ;;  %v443_v23 = vshll.u32 %v1987_v49, 16 }
  0x5f   : > { %v445_v28 = vrot.slane %v443_v23, 5 }
  0x60   : > { %663 = vrot.lane.b32.xlu1 %v2056_v27, %s1844_s29  ;;  %v439_v27 = vrot.slane %v437_v19, 5 }
  0x61   : > { %665 = vrot.lane.b32.xlu0 %v621_v56, %s1844_s29  ;;  %v450_v32 = vor.u32 %v449_v22, %v445_v28  ;;  %v643_v22 = vrot.slane %v641_v24, 4 }
  0x62   : > { %v440_v30 = vor.u32 %v439_v27, %v436_v25  ;;  %v1676_v27 = vrot.slane %v2022_v11, 9 }
  0x63   : > { %v451_v35 = vrot.slane %v450_v32, 4 }
  0x64   : > { %667 = vrot.lane.b32.xlu1 %v624_v57, %s1844_s29  ;;  %v441_v34 = vrot.slane %v440_v30, 4  ;;  %v2281_v32 = vsel %vm1923_vm5, %v1676_v27, %v641_v24 }
  0x65   : > { %728 = vrot.lane.b32.xlu0 %v1956_v31, %s1843_s28  ;;  %v422_v31 = vsel %vm1972_vm6, %v417_v7, %v421_v0  ;;  %v2184_v43 = vsel %vm1972_vm6, %v451_v35, %v455_v37  ;;  %v471_v0 = vshrl.u32 %v2017_v9, 16 }
  0x67   : > { %v473_v7 = vrot.slane %v471_v0, 4  ;;  %v648_v0 = vrot.slane %v2072_v40, 5 }
  0x68   : > { %730 = vrot.lane.b32.xlu1 %v1949_v26, %s1843_s28  ;;  %v432_v26 = vsel %vm1972_vm6, %v427_v8, %v431_v10  ;;  %v283_v10 = vld [vmem:[%s1915_s27 + $0x50] sm:$0x1] }
  0x69   : > { %732 = vrot.lane.b32.xlu0 %v1977_v42, %s1843_s28  ;;  %v474_v12 = vor.u32 %v473_v7, %v469_v6  ;;  %v477_v13 = vshll.u32 %v283_v10, 16  ;;  %v644_v29 = vrot.slane %v283_v10, 5 }
  0x6b   : > { %v2290_v37 = vsel %vm1923_vm5, %v643_v22, %v644_v29 }
  0x6c   : > { %734 = vrot.lane.b32.xlu1 %v1962_v36, %s1843_s28 }
  0x6d   : > { %817 = vrot.lane.b32.xlu0 %v398_v45, %s1846_s5  ;;  %v1675_v45 = vrot.slane %v1994_v54, 9 }
  0x6f   : > { %v2199_v51 = vsel %vm1923_vm5, %v1675_v45, %v634_v21 }
  0x70   : > { %819 = vrot.lane.b32.xlu1 %v408_v47, %s1846_s5  ;;  %v636_v47 = vrot.slane %v634_v21, 4 }
  0x71   : > { %821 = vrot.lane.b32.xlu0 %v422_v31, %s1846_s5 }
  0x72   : > { %v2205_v53 = vsel %vm1923_vm5, %v636_v47, %v637_v48  ;;  %v286_v47 = vld [vmem:[%s1915_s27 + $0x5c] sm:$0x1] }
  0x74   : > { %823 = vrot.lane.b32.xlu1 %v432_v26, %s1846_s5 }
  0x75   : > { %890 = vrot.lane.b32.xlu0 %v621_v56, %s1847_s6 }
  0x78   : > { %892 = vrot.lane.b32.xlu1 %v624_v57, %s1847_s6 }
  0x79   : > { %894 = vrot.lane.b32.xlu0 %v2152_v17, %s1847_s6 }
  0x7c   : > { %896 = vrot.lane.b32.xlu1 %v2159_v20, %s1847_s6 }
  0x7d   : > { %957 = vrot.lane.b32.xlu0 %v1977_v42, %s1848_s7  ;;  %v2179_v42 = vsel %vm1972_vm6, %v441_v34, %v445_v28  ;;  %v485_v34 = vshll.u32 %v2075_v41, 16 }
  0x80   : > { %959 = vrot.lane.b32.xlu1 %v1962_v36, %s1848_s7 }
  0x81   : > { %961 = vrot.lane.b32.xlu0 %v1994_v54, %s1848_s7 }
  0x84   : > { %963 = vrot.lane.b32.xlu1 %v1987_v49, %s1848_s7 }
  0x85   : > { %1046 = vrot.lane.b32.xlu0 %v422_v31, %s1849_s8 }
  0x86   : > { %v721_v36 = vpop.permute.xlu0 %720  ;;  %v723_v39 = vpop.permute.xlu1 %722 }
  0x88   : > { %1048 = vrot.lane.b32.xlu1 %v432_v26, %s1849_s8 }
  0x89   : > { %1050 = vrot.lane.b32.xlu0 %v2179_v42, %s1849_s8 }
  0x8a   : > { %v654_v16 = vpop.permute.xlu0 %653 }
  0x8c   : > { %1052 = vrot.lane.b32.xlu1 %v2184_v43, %s1849_s8 }
  0x8d   : > { %v656_v44 = vpop.permute.xlu1 %655  ;;  %1119 = vrot.lane.b32.xlu0 %v2152_v17, %s1850_s13 }
  0x8e   : > { %v658_v46 = vpop.permute.xlu0 %657 }
  0x90   : > { %1121 = vrot.lane.b32.xlu1 %v2159_v20, %s1850_s13 }
  0x91   : > { %v660_v50 = vpop.permute.xlu1 %659  ;;  %521 = vrot.lane.b32.xlu0 %v422_v31, %s1845_s30  ;;  %v464_v31 = vor.u32 %v463_v3, %v460_v2  ;;  %v1677_v2 = vrot.slane %v2075_v41, 9 }
  0x93   : > { %v506_v52 = vpop.permute.xlu0 %505  ;;  %v2347_v10 = vsel %vm1923_vm5, %v1677_v2, %v648_v0 }
  0x94   : > { %523 = vrot.lane.b32.xlu1 %v432_v26, %s1845_s30  ;;  %554 = vst.msk [vmem:[#allocation2] sm:$0xf] %vm553_vm8, %v506_v52  ;;  %v501_v52 = vshll.u32 %v286_v47, 16 }
  0x95   : > { %702 = vst.msk [vmem:[#allocation2] sm:$0xf] %vm701_vm9, %v654_v16  ;;  %1123 = vrot.lane.b32.xlu0 %v2199_v51, %s1850_s13  ;;  %v487_v16 = vrot.slane %v485_v34, 5 }
  0x96   : > { %v510_v55 = vpop.permute.xlu1 %509  ;;  %769 = vst.msk [vmem:[#allocation2] sm:$0xf] %vm768_vm10, %v721_v36  ;;  %v495_v36 = vshrl.u32 %v2072_v40, 16 }
  0x97   : > { %556 = vst.msk [vmem:[#allocation2 + $0x8] sm:$0xf] %vm553_vm8, %v510_v55  ;;  %v508_v56 = vpop.permute.xlu0 %507 }
  0x98   : > { %704 = vst.msk [vmem:[#allocation2 + $0x8] sm:$0xf] %vm701_vm9, %v658_v46  ;;  %1125 = vrot.lane.b32.xlu1 %v2205_v53, %s1850_s13  ;;  %v497_v45 = vrot.slane %v495_v36, 4 }
  0x99   : > { %555 = vst.msk [vmem:[#allocation2 + $0x4] sm:$0xf] %vm553_vm8, %v508_v56  ;;  %525 = vrot.lane.b32.xlu0 %v2179_v42, %s1845_s30 }
  0x9a   : > { %703 = vst.msk [vmem:[#allocation2 + $0x4] sm:$0xf] %vm701_vm9, %v656_v44  ;;  %v512_v57 = vpop.permute.xlu1 %511 }
  0x9b   : > { %557 = vst.msk [vmem:[#allocation2 + $0xc] sm:$0xf] %vm553_vm8, %v512_v57  ;;  %v725_v58 = vpop.permute.xlu0 %724 }
  0x9c   : > { %770 = vst.msk [vmem:[#allocation2 + $0x4] sm:$0xf] %vm768_vm10, %v723_v39  ;;  %527 = vrot.lane.b32.xlu1 %v2184_v43, %s1845_s30  ;;  %771 = vst.msk [vmem:[#allocation2 + $0x8] sm:$0xf] %vm768_vm10, %v725_v58 }
  0x9d   : > { %705 = vst.msk [vmem:[#allocation2 + $0xc] sm:$0xf] %vm701_vm9, %v660_v50  ;;  %669 = vrot.lane.b32.xlu0 %v2152_v17, %s1844_s29  ;;  %v475_v17 = vrot.slane %v474_v12, 4 }
  0x9e   : > { %v727_v59 = vpop.permute.xlu1 %726 }
  0x9f   : > { %772 = vst.msk [vmem:[#allocation2 + $0xc] sm:$0xf] %vm768_vm10, %v727_v59  ;;  %v810_v62 = vpop.permute.xlu0 %809 }
  0xa0   : > { %671 = vrot.lane.b32.xlu1 %v2159_v20, %s1844_s29  ;;  %858 = vst.msk [vmem:[#allocation2] sm:$0xf] %vm857_vm11, %v810_v62 }
  0xa1   : > { %673 = vrot.lane.b32.xlu0 %v2199_v51, %s1844_s29 }
  0xa2   : > { %v812_v1 = vpop.permute.xlu1 %811 }
  0xa3   : > { %859 = vst.msk [vmem:[#allocation2 + $0x4] sm:$0xf] %vm857_vm11, %v812_v1  ;;  %v814_v5 = vpop.permute.xlu0 %813 }
  0xa4   : > { %675 = vrot.lane.b32.xlu1 %v2205_v53, %s1844_s29  ;;  %860 = vst.msk [vmem:[#allocation2 + $0x8] sm:$0xf] %vm857_vm11, %v814_v5  ;;  %v650_v5 = vrot.slane %v648_v0, 4 }
  0xa5   : > { %736 = vrot.lane.b32.xlu0 %v1994_v54, %s1843_s28  ;;  %v465_v54 = vrot.slane %v464_v31, 4 }
  0xa6   : > { %v816_v8 = vpop.permute.xlu1 %815 }
  0xa7   : > { %861 = vst.msk [vmem:[#allocation2 + $0xc] sm:$0xf] %vm857_vm11, %v816_v8  ;;  %v883_v26 = vpop.permute.xlu0 %882  ;;  %v2259_v19 = vsel %vm1972_vm6, %v465_v54, %v469_v6  ;;  %v651_v6 = vrot.slane %v286_v47, 5 }
  0xa8   : > { %738 = vrot.lane.b32.xlu1 %v1987_v49, %s1843_s28  ;;  %931 = vst.msk [vmem:[#allocation2] sm:$0xf] %vm930_vm12, %v883_v26  ;;  %v479_v49 = vrot.slane %v477_v13, 5 }
  0xa9   : > { %740 = vrot.lane.b32.xlu0 %v2022_v11, %s1843_s28  ;;  %v2355_v26 = vsel %vm1923_vm5, %v650_v5, %v651_v6  ;;  %v292_v6 = vld [vmem:[%s1915_s27 + $0x74] sm:$0x1] }
  0xaa   : > { %v885_v14 = vpop.permute.xlu1 %884  ;;  %v2266_v23 = vsel %vm1972_vm6, %v475_v17, %v479_v49  ;;  %v2375_v49 = vld [vmem:[%s1915_s27 + $0x64] sm:$0xf] }
  0xab   : > { %932 = vst.msk [vmem:[#allocation2 + $0x4] sm:$0xf] %vm930_vm12, %v885_v14  ;;  %v887_v15 = vpop.permute.xlu0 %886  ;;  %v799_v24 = vshrl.u32 %v2375_v49, 16 }
  0xac   : > { %742 = vrot.lane.b32.xlu1 %v2017_v9, %s1843_s28  ;;  %933 = vst.msk [vmem:[#allocation2 + $0x8] sm:$0xf] %vm930_vm12, %v887_v15  ;;  %v2369_v15 = vld [vmem:[%s1915_s27 + $0x60] sm:$0xf] }
  0xad   : > { %825 = vrot.lane.b32.xlu0 %v2179_v42, %s1846_s5  ;;  %v491_v42 = vshll.u32 %v2072_v40, 16 }
  0xae   : > { %v889_v18 = vpop.permute.xlu1 %888 }
  0xaf   : > { %934 = vst.msk [vmem:[#allocation2 + $0xc] sm:$0xf] %vm930_vm12, %v889_v18  ;;  %v950_v20 = vpop.permute.xlu0 %949  ;;  %v493_v44 = vrot.slane %v491_v42, 5  ;;  %v786_v18 = vshrl.u32 %v2369_v15, 16 }
  0xb0   : > { %827 = vrot.lane.b32.xlu1 %v2184_v43, %s1846_s5  ;;  %998 = vst.msk [vmem:[#allocation2] sm:$0xf] %vm997_vm13, %v950_v20  ;;  %v484_v43 = vrot.slane %v482_v33, 4  ;;  %v289_v33 = vld [vmem:[%s1915_s27 + $0x68] sm:$0x1] }
  0xb1   : > { %829 = vrot.lane.b32.xlu0 %v2259_v19, %s1846_s5  ;;  %v788_v27 = vrot.slane %v786_v18, 4  ;;  %v805_v42 = vshll.u32 %v289_v33, 16 }
  0xb2   : > { %v952_v25 = vpop.permute.xlu1 %951  ;;  %v488_v48 = vor.u32 %v487_v16, %v484_v43 }
  0xb3   : > { %999 = vst.msk [vmem:[#allocation2 + $0x4] sm:$0xf] %vm997_vm13, %v952_v25  ;;  %v954_v28 = vpop.permute.xlu0 %953 }
  0xb4   : > { %831 = vrot.lane.b32.xlu1 %v2266_v23, %s1846_s5  ;;  %1000 = vst.msk [vmem:[#allocation2 + $0x8] sm:$0xf] %vm997_vm13, %v954_v28 }
  0xb5   : > { %898 = vrot.lane.b32.xlu0 %v2199_v51, %s1847_s6  ;;  %v498_v51 = vor.u32 %v497_v45, %v493_v44 }
  0xb6   : > { %v956_v30 = vpop.permute.xlu1 %955 }
  0xb7   : > { %1001 = vst.msk [vmem:[#allocation2 + $0xc] sm:$0xf] %vm997_vm13, %v956_v30  ;;  %v1039_v35 = vpop.permute.xlu0 %1038  ;;  %v499_v56 = vrot.slane %v498_v51, 4  ;;  %v801_v30 = vrot.slane %v799_v24, 4  ;;  %v2420_v51 = vld [vmem:[%s1915_s27 + $0x6c] sm:$0xf] }
  0xb8   : > { %900 = vrot.lane.b32.xlu1 %v2205_v53, %s1847_s6  ;;  %1087 = vst.msk [vmem:[#allocation2] sm:$0xf] %vm1086_vm14, %v1039_v35  ;;  %v1679_v24 = vrot.slane %v2420_v51, 9 }
  0xb9   : > { %902 = vrot.lane.b32.xlu0 %v2281_v32, %s1847_s6 }
  0xba   : > { %v1041_v39 = vpop.permute.xlu1 %1040 }
  0xbb   : > { %1088 = vst.msk [vmem:[#allocation2 + $0x4] sm:$0xf] %vm1086_vm14, %v1041_v39  ;;  %v1043_v21 = vpop.permute.xlu0 %1042 }
  0xbc   : > { %904 = vrot.lane.b32.xlu1 %v2290_v37, %s1847_s6  ;;  %1089 = vst.msk [vmem:[#allocation2 + $0x8] sm:$0xf] %vm1086_vm14, %v1043_v21 }
  0xbd   : > { %965 = vrot.lane.b32.xlu0 %v2022_v11, %s1848_s7  ;;  %v489_v11 = vrot.slane %v488_v48, 4  ;;  %v1678_v48 = vrot.slane %v2369_v15, 9 }
  0xbe   : > { %v1045_v46 = vpop.permute.xlu1 %1044 }
  0xbf   : > { %1090 = vst.msk [vmem:[#allocation2 + $0xc] sm:$0xf] %vm1086_vm14, %v1045_v46  ;;  %v1112_v50 = vpop.permute.xlu0 %1111  ;;  %v2318_v58 = vsel %vm1972_vm6, %v489_v11, %v493_v44  ;;  %v877_v46 = vrot.slane %v2375_v49, 5 }
  0xc0   : > { %967 = vrot.lane.b32.xlu1 %v2017_v9, %s1848_s7  ;;  %1160 = vst.msk [vmem:[#allocation2] sm:$0xf] %vm1159_vm15, %v1112_v50  ;;  %v503_v9 = vrot.slane %v501_v52, 5 }
  0xc1   : > { %969 = vrot.lane.b32.xlu0 %v2075_v41, %s1848_s7  ;;  %v879_v52 = vrot.slane %v877_v46, 4 }
  0xc2   : > { %v1114_v53 = vpop.permute.xlu1 %1113  ;;  %v2325_v60 = vsel %vm1972_vm6, %v499_v56, %v503_v9  ;;  %v878_v56 = vsel %vm1923_vm5, %v1678_v48, %v877_v46  ;;  %v1015_v9 = vshrl.u32 %v2420_v51, 16 }
  0xc3   : > { %1161 = vst.msk [vmem:[#allocation2 + $0x4] sm:$0xf] %vm1159_vm15, %v1114_v53  ;;  %v514_v55 = vpop.permute.xlu0 %513  ;;  %v880_v53 = vrot.slane %v289_v33, 5 }
  0xc4   : > { %971 = vrot.lane.b32.xlu1 %v2072_v40, %s1848_s7  ;;  %558 = vst.msk [vmem:[#allocation2 + $0x10] sm:$0xf] %vm553_vm8, %v514_v55  ;;  %v2426_v55 = vld [vmem:[%s1915_s27 + $0x70] sm:$0xf] }
  0xc5   : > { %1054 = vrot.lane.b32.xlu0 %v2259_v19, %s1849_s8  ;;  %v1106_v18 = vrot.slane %v2426_v55, 5 }
  0xc6   : > { %v516_v57 = vpop.permute.xlu1 %515 }
  0xc7   : > { %559 = vst.msk [vmem:[#allocation2 + $0x14] sm:$0xf] %vm553_vm8, %v516_v57  ;;  %v1116_v59 = vpop.permute.xlu0 %1115  ;;  %v1018_v57 = vshll.u32 %v2420_v51, 16  ;;  %v1107_v38 = vsel %vm1923_vm5, %v1679_v24, %v1106_v18 }
  0xc8   : > { %1056 = vrot.lane.b32.xlu1 %v2266_v23, %s1849_s8  ;;  %1162 = vst.msk [vmem:[#allocation2 + $0x8] sm:$0xf] %vm1159_vm15, %v1116_v59  ;;  %v881_v59 = vsel %vm1923_vm5, %v879_v52, %v880_v53 }
  0xc9   : > { %1058 = vrot.lane.b32.xlu0 %v2318_v58, %s1849_s8  ;;  %v1020_v0 = vrot.slane %v1018_v57, 5 }
  0xca   : > { %v1118_v61 = vpop.permute.xlu1 %1117  ;;  %v1794_v62 = vld [vmem:[#allocation2] sm:$0xff]  }
  0xcb   : > { %1163 = vst.msk [vmem:[#allocation2 + $0xc] sm:$0xf] %vm1159_vm15, %v1118_v61  ;;  %1719 = vmatprep.mubr.msk.bf16.mxu0 %vm1252_vm0, %v1794_v62  ;;  %v518_v63 = vpop.permute.xlu0 %517  ;;  %v1028_v61 = vshrl.u32 %v2426_v55, 16 }
  0xcc   : > { %1060 = vrot.lane.b32.xlu1 %v2325_v60, %s1849_s8  ;;  %560 = vst.msk [vmem:[#allocation2 + $0x18] sm:$0xf] %vm553_vm8, %v518_v63  ;;  %v1017_v63 = vrot.slane %v1015_v9, 4 }
  0xcd   : > { %1127 = vrot.lane.b32.xlu0 %v2281_v32, %s1850_s13 }
  0xce   : > { %v520_v1 = vpop.permute.xlu1 %519 }
  0xcf   : > { %561 = vst.msk [vmem:[#allocation2 + $0x1c] sm:$0xf] %vm553_vm8, %v520_v1  ;;  %v662_v3 = vpop.permute.xlu0 %661 }
  0xd0   : > { %1129 = vrot.lane.b32.xlu1 %v2290_v37, %s1850_s13  ;;  %706 = vst.msk [vmem:[#allocation2 + $0x10] sm:$0xf] %vm701_vm9, %v662_v3  ;;  %v1030_v3 = vrot.slane %v1028_v61, 4 }
  0xd1   : > { %529 = vrot.lane.b32.xlu0 %v2259_v19, %s1845_s30  ;;  %v789_v19 = vshll.u32 %v2369_v15, 16 }
  0xd2   : > { %v664_v7 = vpop.permute.xlu1 %663  ;;  %v1796_v8 = vld [vmem:[#allocation2 + $0x8] sm:$0xff]  }
  0xd3   : > { %707 = vst.msk [vmem:[#allocation2 + $0x14] sm:$0xf] %vm701_vm9, %v664_v7  ;;  %1720 = vmatmul.mubr.msk.bf16.vlgmr.msra.gmra.mxu0 %vm1252_vm0, %v1796_v8  ;;  %v666_v31 = vpop.permute.xlu0 %665  ;;  %v791_v28 = vrot.slane %v789_v19, 5  ;;  %v1021_v7 = vor.u32 %v1020_v0, %v1017_v63 }
  0xd4   : > { %531 = vrot.lane.b32.xlu1 %v2266_v23, %s1845_s30  ;;  %708 = vst.msk [vmem:[#allocation2 + $0x18] sm:$0xf] %vm701_vm9, %v666_v31  ;;  %v795_v23 = vshll.u32 %v2375_v49, 16  ;;  %v1034_v31 = vshll.u32 %v292_v6, 16 }
  0xd5   : > { %1131 = vrot.lane.b32.xlu0 %v2347_v10, %s1850_s13  ;;  %v792_v34 = vor.u32 %v791_v28, %v788_v27  ;;  %v1108_v27 = vrot.slane %v1106_v18, 4  ;;  %v1109_v28 = vrot.slane %v292_v6, 5 }
  0xd6   : > { %v668_v12 = vpop.permute.xlu1 %667  ;;  %v797_v29 = vrot.slane %v795_v23, 5 }
  0xd7   : > { %709 = vst.msk [vmem:[#allocation2 + $0x1c] sm:$0xf] %vm701_vm9, %v668_v12  ;;  %v729_v13 = vpop.permute.xlu0 %728  ;;  %v793_v39 = vrot.slane %v792_v34, 4  ;;  %v1022_v12 = vrot.slane %v1021_v7, 4 }
  0xd8   : > { %1133 = vrot.lane.b32.xlu1 %v2355_v26, %s1850_s13  ;;  %773 = vst.msk [vmem:[#allocation2 + $0x10] sm:$0xf] %vm768_vm10, %v729_v13 }
  0xd9   : > { %533 = vrot.lane.b32.xlu0 %v2318_v58, %s1845_s30  ;;  %v798_v21 = vsel %vm1972_vm6, %v793_v39, %v797_v29 }
  0xda   : > { %v731_v14 = vpop.permute.xlu1 %730 }
  0xdb   : > { %774 = vst.msk [vmem:[#allocation2 + $0x14] sm:$0xf] %vm768_vm10, %v731_v14  ;;  %v733_v54 = vpop.permute.xlu0 %732 }
  0xdc   : > { %535 = vrot.lane.b32.xlu1 %v2325_v60, %s1845_s30  ;;  %775 = vst.msk [vmem:[#allocation2 + $0x18] sm:$0xf] %vm768_vm10, %v733_v54  ;;  %v1036_v54 = vrot.slane %v1034_v31, 5  ;;  %s1665_s30 = sshll.u32 %s2661_s16, 1 }
  0xdd   : > { %677 = vrot.lane.b32.xlu0 %v2281_v32, %s1844_s29 }
  0xde   : > { %v735_v17 = vpop.permute.xlu1 %734 }
  0xdf   : > { %776 = vst.msk [vmem:[#allocation2 + $0x1c] sm:$0xf] %vm768_vm10, %v735_v17  ;;  %v818_v20 = vpop.permute.xlu0 %817 }
  0xe0   : > { %679 = vrot.lane.b32.xlu1 %v2290_v37, %s1844_s29  ;;  %862 = vst.msk [vmem:[#allocation2 + $0x10] sm:$0xf] %vm857_vm11, %v818_v20  ;;  %v802_v37 = vor.u32 %v801_v30, %v797_v29  ;;  %v1110_v30 = vsel %vm1923_vm5, %v1108_v27, %v1109_v28 }
  0xe1   : > { %681 = vrot.lane.b32.xlu0 %v2347_v10, %s1844_s29 }
  0xe2   : > { %v820_v25 = vpop.permute.xlu1 %819  ;;  %v803_v43 = vrot.slane %v802_v37, 4 }
  0xe3   : > { %863 = vst.msk [vmem:[#allocation2 + $0x14] sm:$0xf] %vm857_vm11, %v820_v25  ;;  %v822_v22 = vpop.permute.xlu0 %821 }
  0xe4   : > { %683 = vrot.lane.b32.xlu1 %v2355_v26, %s1844_s29  ;;  %864 = vst.msk [vmem:[#allocation2 + $0x18] sm:$0xf] %vm857_vm11, %v822_v22  ;;  %s2551_s29 = scalar_lea.vmem %s2643_s2, %s1664_s26 }
  0xe5   : > { %744 = vrot.lane.b32.xlu0 %v2075_v41, %s1843_s28 }
  0xe6   : > { %v824_v32 = vpop.permute.xlu1 %823 }
  0xe7   : > { %865 = vst.msk [vmem:[#allocation2 + $0x1c] sm:$0xf] %vm857_vm11, %v824_v32  ;;  %v891_v35 = vpop.permute.xlu0 %890 }
  0xe8   : > { %746 = vrot.lane.b32.xlu1 %v2072_v40, %s1843_s28  ;;  %935 = vst.msk [vmem:[#allocation2 + $0x10] sm:$0xf] %vm930_vm12, %v891_v35  ;;  %v807_v40 = vrot.slane %v805_v42, 5 }
  0xe9   : > { %748 = vrot.lane.b32.xlu0 %v2369_v15, %s1843_s28 }
  0xea   : > { %v893_v36 = vpop.permute.xlu1 %892  ;;  %v808_v45 = vsel %vm1972_vm6, %v803_v43, %v807_v40 }
  0xeb   : > { %936 = vst.msk [vmem:[#allocation2 + $0x14] sm:$0xf] %vm930_vm12, %v893_v36  ;;  %v895_v41 = vpop.permute.xlu0 %894 }
  0xec   : > { %750 = vrot.lane.b32.xlu1 %v2375_v49, %s1843_s28  ;;  %937 = vst.msk [vmem:[#allocation2 + $0x18] sm:$0xf] %vm930_vm12, %v895_v41 }
  0xed   : > { %833 = vrot.lane.b32.xlu0 %v2318_v58, %s1846_s5 }
  0xee   : > { %v897_v16 = vpop.permute.xlu1 %896 }
  0xef   : > { %938 = vst.msk [vmem:[#allocation2 + $0x1c] sm:$0xf] %vm930_vm12, %v897_v16  ;;  %v958_v44 = vpop.permute.xlu0 %957 }
  0xf0   : > { %835 = vrot.lane.b32.xlu1 %v2325_v60, %s1846_s5  ;;  %1002 = vst.msk [vmem:[#allocation2 + $0x10] sm:$0xf] %vm997_vm13, %v958_v44  ;;  %v1024_v60 = vshll.u32 %v2426_v55, 16 }
  0xf1   : > { %837 = vrot.lane.b32.xlu0 %v798_v21, %s1846_s5 }
  0xf2   : > { %v960_v47 = vpop.permute.xlu1 %959  ;;  %v1026_v2 = vrot.slane %v1024_v60, 5 }
  0xf3   : > { %1003 = vst.msk [vmem:[#allocation2 + $0x14] sm:$0xf] %vm997_vm13, %v960_v47  ;;  %v962_v50 = vpop.permute.xlu0 %961 }
  0xf4   : > { %839 = vrot.lane.b32.xlu1 %v808_v45, %s1846_s5  ;;  %1004 = vst.msk [vmem:[#allocation2 + $0x18] sm:$0xf] %vm997_vm13, %v962_v50  ;;  %v1027_v17 = vsel %vm1972_vm6, %v1022_v12, %v1026_v2  ;;  %s249_s5 = sadd.s32 %s1665_s30, %s2665_s15 }
  0xf5   : > { %906 = vrot.lane.b32.xlu0 %v2347_v10, %s1847_s6  ;;  %v1031_v10 = vor.u32 %v1030_v3, %v1026_v2  ;;  %s257_s11 = scalar_lea.vmem %s2645_s4, %s249_s5 }
  0xf6   : > { %v964_v11 = vpop.permute.xlu1 %963 }
  0xf7   : > { %1005 = vst.msk [vmem:[#allocation2 + $0x1c] sm:$0xf] %vm997_vm13, %v964_v11  ;;  %v1047_v58 = vpop.permute.xlu0 %1046  ;;  %v1032_v14 = vrot.slane %v1031_v10, 4 }
  0xf8   : > { %908 = vrot.lane.b32.xlu1 %v2355_v26, %s1847_s6  ;;  %1091 = vst.msk [vmem:[#allocation2 + $0x10] sm:$0xf] %vm1086_vm14, %v1047_v58 }
  0xf9   : > { %910 = vrot.lane.b32.xlu0 %v878_v56, %s1847_s6  ;;  %v1037_v19 = vsel %vm1972_vm6, %v1032_v14, %v1036_v54 }
  0xfa   : > { %v1049_v62 = vpop.permute.xlu1 %1048 }
  0xfb   : > { %1092 = vst.msk [vmem:[#allocation2 + $0x14] sm:$0xf] %vm1086_vm14, %v1049_v62  ;;  %v1051_v1 = vpop.permute.xlu0 %1050 }
  0xfc   : > { %912 = vrot.lane.b32.xlu1 %v881_v59, %s1847_s6  ;;  %1093 = vst.msk [vmem:[#allocation2 + $0x18] sm:$0xf] %vm1086_vm14, %v1051_v1 }
  0xfd   : > { %973 = vrot.lane.b32.xlu0 %v2369_v15, %s1848_s7 }
  0xfe   : > { %v1053_v5 = vpop.permute.xlu1 %1052 }
  0xff   : > { %1094 = vst.msk [vmem:[#allocation2 + $0x1c] sm:$0xf] %vm1086_vm14, %v1053_v5  ;;  %v1120_v8 = vpop.permute.xlu0 %1119 }
 0x100   : > { %975 = vrot.lane.b32.xlu1 %v2375_v49, %s1848_s7  ;;  %1164 = vst.msk [vmem:[#allocation2 + $0x10] sm:$0xf] %vm1159_vm15, %v1120_v8 }
 0x101   : > { %977 = vrot.lane.b32.xlu0 %v2420_v51, %s1848_s7 }
 0x102   : > { %v1122_v26 = vpop.permute.xlu1 %1121 }
 0x103   : > { %1165 = vst.msk [vmem:[#allocation2 + $0x14] sm:$0xf] %vm1159_vm15, %v1122_v26  ;;  %v522_v13 = vpop.permute.xlu0 %521 }
 0x104   : > { %979 = vrot.lane.b32.xlu1 %v2426_v55, %s1848_s7  ;;  %562 = vst.msk [vmem:[#allocation2 + $0x20] sm:$0xf] %vm553_vm8, %v522_v13 }
 0x105   : > { %1062 = vrot.lane.b32.xlu0 %v798_v21, %s1849_s8 }
 0x106   : > { %v524_v15 = vpop.permute.xlu1 %523 }
 0x107   : > { %563 = vst.msk [vmem:[#allocation2 + $0x24] sm:$0xf] %vm553_vm8, %v524_v15  ;;  %v1124_v49 = vpop.permute.xlu0 %1123 }
 0x108   : > { %1064 = vrot.lane.b32.xlu1 %v808_v45, %s1849_s8  ;;  %1166 = vst.msk [vmem:[#allocation2 + $0x18] sm:$0xf] %vm1159_vm15, %v1124_v49 }
 0x109   : > { %1066 = vrot.lane.b32.xlu0 %v1027_v17, %s1849_s8 }
 0x10a   : > { %v1126_v20 = vpop.permute.xlu1 %1125  ;;  %v1797_v23 = vld [vmem:[#allocation2 + $0x10] sm:$0xff]  }
 0x10b   : > { %1167 = vst.msk [vmem:[#allocation2 + $0x1c] sm:$0xf] %vm1159_vm15, %v1126_v20  ;;  %1723 = vmatprep.mubr.msk.bf16.mxu0 %vm1252_vm0, %v1797_v23  ;;  %v526_v25 = vpop.permute.xlu0 %525 }
 0x10c   : > { %1068 = vrot.lane.b32.xlu1 %v1037_v19, %s1849_s8  ;;  %564 = vst.msk [vmem:[#allocation2 + $0x28] sm:$0xf] %vm553_vm8, %v526_v25  ;;  %s250_s8 = scalar_lea.vmem %s2644_s3, %s249_s5 }
 0x10d   : > { %1135 = vrot.lane.b32.xlu0 %v878_v56, %s1850_s13 }
 0x10e   : > { %v528_v22 = vpop.permute.xlu1 %527 }
 0x10f   : > { %565 = vst.msk [vmem:[#allocation2 + $0x2c] sm:$0xf] %vm553_vm8, %v528_v22  ;;  %v670_v29 = vpop.permute.xlu0 %669 }
 0x110   : > { %1137 = vrot.lane.b32.xlu1 %v881_v59, %s1850_s13  ;;  %710 = vst.msk [vmem:[#allocation2 + $0x20] sm:$0xf] %vm701_vm9, %v670_v29 }
 0x111   : > { %1139 = vrot.lane.b32.xlu0 %v1107_v38, %s1850_s13 }
 0x112   : > { %v672_v32 = vpop.permute.xlu1 %671  ;;  %v1798_v33 = vld [vmem:[#allocation2 + $0x18] sm:$0xff]  }
 0x113   : > { %711 = vst.msk [vmem:[#allocation2 + $0x24] sm:$0xf] %vm701_vm9, %v672_v32  ;;  %1724 = vmatmul.mubr.msk.bf16.gmra.mxu0 %vm1252_vm0, %v1798_v33  ;;  %v674_v34 = vpop.permute.xlu0 %673 }
 0x114   : > { %1141 = vrot.lane.b32.xlu1 %v1110_v30, %s1850_s13  ;;  %712 = vst.msk [vmem:[#allocation2 + $0x28] sm:$0xf] %vm701_vm9, %v674_v34 }
 0x116   : > { %v676_v35 = vpop.permute.xlu1 %675 }
 0x117   : > { %713 = vst.msk [vmem:[#allocation2 + $0x2c] sm:$0xf] %vm701_vm9, %v676_v35  ;;  %v737_v37 = vpop.permute.xlu0 %736 }
 0x118   : > { %777 = vst.msk [vmem:[#allocation2 + $0x20] sm:$0xf] %vm768_vm10, %v737_v37 }
 0x11a   : > { %v739_v4 = vpop.permute.xlu1 %738 }
 0x11b   : > { %778 = vst.msk [vmem:[#allocation2 + $0x24] sm:$0xf] %vm768_vm10, %v739_v4  ;;  %v741_v42 = vpop.permute.xlu0 %740 }
 0x11c   : > { %779 = vst.msk [vmem:[#allocation2 + $0x28] sm:$0xf] %vm768_vm10, %v741_v42 }
 0x11e   : > { %v743_v36 = vpop.permute.xlu1 %742 }
 0x11f   : > { %780 = vst.msk [vmem:[#allocation2 + $0x2c] sm:$0xf] %vm768_vm10, %v743_v36  ;;  %v826_v39 = vpop.permute.xlu0 %825 }
 0x120   : > { %866 = vst.msk [vmem:[#allocation2 + $0x20] sm:$0xf] %vm857_vm11, %v826_v39 }
 0x122   : > { %v828_v41 = vpop.permute.xlu1 %827 }
 0x123   : > { %867 = vst.msk [vmem:[#allocation2 + $0x24] sm:$0xf] %vm857_vm11, %v828_v41  ;;  %v830_v43 = vpop.permute.xlu0 %829 }
 0x124   : > { %868 = vst.msk [vmem:[#allocation2 + $0x28] sm:$0xf] %vm857_vm11, %v830_v43 }
 0x126   : > { %v832_v40 = vpop.permute.xlu1 %831 }
 0x127   : > { %869 = vst.msk [vmem:[#allocation2 + $0x2c] sm:$0xf] %vm857_vm11, %v832_v40  ;;  %v899_v16 = vpop.permute.xlu0 %898 }
 0x128   : > { %939 = vst.msk [vmem:[#allocation2 + $0x20] sm:$0xf] %vm930_vm12, %v899_v16 }
 0x12a   : > { %v901_v21 = vpop.permute.xlu1 %900 }
 0x12b   : > { %940 = vst.msk [vmem:[#allocation2 + $0x24] sm:$0xf] %vm930_vm12, %v901_v21  ;;  %v903_v44 = vpop.permute.xlu0 %902 }
 0x12c   : > { %941 = vst.msk [vmem:[#allocation2 + $0x28] sm:$0xf] %vm930_vm12, %v903_v44 }
 0x12e   : > { %v905_v45 = vpop.permute.xlu1 %904 }
 0x12f   : > { %942 = vst.msk [vmem:[#allocation2 + $0x2c] sm:$0xf] %vm930_vm12, %v905_v45  ;;  %v966_v46 = vpop.permute.xlu0 %965 }
 0x130   : > { %1006 = vst.msk [vmem:[#allocation2 + $0x20] sm:$0xf] %vm997_vm13, %v966_v46 }
 0x132   : > { %v968_v47 = vpop.permute.xlu1 %967 }
 0x133   : > { %1007 = vst.msk [vmem:[#allocation2 + $0x24] sm:$0xf] %vm997_vm13, %v968_v47  ;;  %v970_v48 = vpop.permute.xlu0 %969 }
 0x134   : > { %1008 = vst.msk [vmem:[#allocation2 + $0x28] sm:$0xf] %vm997_vm13, %v970_v48 }
 0x136   : > { %v972_v50 = vpop.permute.xlu1 %971 }
 0x137   : > { %1009 = vst.msk [vmem:[#allocation2 + $0x2c] sm:$0xf] %vm997_vm13, %v972_v50  ;;  %v1055_v51 = vpop.permute.xlu0 %1054 }
 0x138   : > { %1095 = vst.msk [vmem:[#allocation2 + $0x20] sm:$0xf] %vm1086_vm14, %v1055_v51 }
 0x13a   : > { %v1057_v52 = vpop.permute.xlu1 %1056 }
 0x13b   : > { %1096 = vst.msk [vmem:[#allocation2 + $0x24] sm:$0xf] %vm1086_vm14, %v1057_v52  ;;  %v1059_v53 = vpop.permute.xlu0 %1058 }
 0x13c   : > { %1097 = vst.msk [vmem:[#allocation2 + $0x28] sm:$0xf] %vm1086_vm14, %v1059_v53 }
 0x13e   : > { %v1061_v11 = vpop.permute.xlu1 %1060 }
 0x13f   : > { %1098 = vst.msk [vmem:[#allocation2 + $0x2c] sm:$0xf] %vm1086_vm14, %v1061_v11  ;;  %v1128_v55 = vpop.permute.xlu0 %1127 }
 0x140   : > { %1168 = vst.msk [vmem:[#allocation2 + $0x20] sm:$0xf] %vm1159_vm15, %v1128_v55 }
 0x142   : > { %v1130_v56 = vpop.permute.xlu1 %1129 }
 0x143   : > { %1169 = vst.msk [vmem:[#allocation2 + $0x24] sm:$0xf] %vm1159_vm15, %v1130_v56  ;;  %v530_v9 = vpop.permute.xlu0 %529 }
 0x144   : > { %566 = vst.msk [vmem:[#allocation2 + $0x30] sm:$0xf] %vm553_vm8, %v530_v9 }
 0x146   : > { %v532_v57 = vpop.permute.xlu1 %531 }
 0x147   : > { %567 = vst.msk [vmem:[#allocation2 + $0x34] sm:$0xf] %vm553_vm8, %v532_v57  ;;  %v1132_v58 = vpop.permute.xlu0 %1131 }
 0x148   : > { %1170 = vst.msk [vmem:[#allocation2 + $0x28] sm:$0xf] %vm1159_vm15, %v1132_v58 }
 0x14a   : > { %v1134_v59 = vpop.permute.xlu1 %1133  ;;  %v1799_v60 = vld [vmem:[#allocation2 + $0x20] sm:$0xff]  }
 0x14b   : > { %1171 = vst.msk [vmem:[#allocation2 + $0x2c] sm:$0xf] %vm1159_vm15, %v1134_v59  ;;  %1727 = vmatprep.mubr.msk.bf16.mxu1 %vm1252_vm0, %v1799_v60  ;;  %v534_v61 = vpop.permute.xlu0 %533 }
 0x14c   : > { %568 = vst.msk [vmem:[#allocation2 + $0x38] sm:$0xf] %vm553_vm8, %v534_v61 }
 0x14e   : > { %v536_v62 = vpop.permute.xlu1 %535 }
 0x14f   : > { %569 = vst.msk [vmem:[#allocation2 + $0x3c] sm:$0xf] %vm553_vm8, %v536_v62  ;;  %v678_v63 = vpop.permute.xlu0 %677 }
 0x150   : > { %714 = vst.msk [vmem:[#allocation2 + $0x30] sm:$0xf] %vm701_vm9, %v678_v63 }
 0x152   : > { %v680_v0 = vpop.permute.xlu1 %679  ;;  %v1800_v1 = vld [vmem:[#allocation2 + $0x28] sm:$0xff]  }
 0x153   : > { %715 = vst.msk [vmem:[#allocation2 + $0x34] sm:$0xf] %vm701_vm9, %v680_v0  ;;  %1728 = vmatmul.mubr.msk.bf16.vlgmr.msra.gmra.mxu1 %vm1252_vm0, %v1800_v1  ;;  %v682_v2 = vpop.permute.xlu0 %681 }
 0x154   : > { %716 = vst.msk [vmem:[#allocation2 + $0x38] sm:$0xf] %vm701_vm9, %v682_v2 }
 0x156   : > { %v684_v3 = vpop.permute.xlu1 %683 }
 0x157   : > { %717 = vst.msk [vmem:[#allocation2 + $0x3c] sm:$0xf] %vm701_vm9, %v684_v3  ;;  %v745_v5 = vpop.permute.xlu0 %744 }
 0x158   : > { %781 = vst.msk [vmem:[#allocation2 + $0x30] sm:$0xf] %vm768_vm10, %v745_v5 }
 0x15a   : > { %v747_v6 = vpop.permute.xlu1 %746 }
 0x15b   : > { %782 = vst.msk [vmem:[#allocation2 + $0x34] sm:$0xf] %vm768_vm10, %v747_v6  ;;  %v749_v7 = vpop.permute.xlu0 %748 }
 0x15c   : > { %783 = vst.msk [vmem:[#allocation2 + $0x38] sm:$0xf] %vm768_vm10, %v749_v7 }
 0x15e   : > { %v751_v8 = vpop.permute.xlu1 %750 }
 0x15f   : > { %784 = vst.msk [vmem:[#allocation2 + $0x3c] sm:$0xf] %vm768_vm10, %v751_v8  ;;  %v834_v10 = vpop.permute.xlu0 %833 }
 0x160   : > { %870 = vst.msk [vmem:[#allocation2 + $0x30] sm:$0xf] %vm857_vm11, %v834_v10 }
 0x162   : > { %v836_v31 = vpop.permute.xlu1 %835 }
 0x163   : > { %871 = vst.msk [vmem:[#allocation2 + $0x34] sm:$0xf] %vm857_vm11, %v836_v31  ;;  %v838_v26 = vpop.permute.xlu0 %837 }
 0x164   : > { %872 = vst.msk [vmem:[#allocation2 + $0x38] sm:$0xf] %vm857_vm11, %v838_v26 }
 0x166   : > { %v840_v12 = vpop.permute.xlu1 %839 }
 0x167   : > { %873 = vst.msk [vmem:[#allocation2 + $0x3c] sm:$0xf] %vm857_vm11, %v840_v12  ;;  %v907_v13 = vpop.permute.xlu0 %906 }
 0x168   : > { %943 = vst.msk [vmem:[#allocation2 + $0x30] sm:$0xf] %vm930_vm12, %v907_v13 }
 0x16a   : > { %v909_v14 = vpop.permute.xlu1 %908 }
 0x16b   : > { %944 = vst.msk [vmem:[#allocation2 + $0x34] sm:$0xf] %vm930_vm12, %v909_v14  ;;  %v911_v54 = vpop.permute.xlu0 %910 }
 0x16c   : > { %945 = vst.msk [vmem:[#allocation2 + $0x38] sm:$0xf] %vm930_vm12, %v911_v54 }
 0x16e   : > { %v913_v15 = vpop.permute.xlu1 %912 }
 0x16f   : > { %946 = vst.msk [vmem:[#allocation2 + $0x3c] sm:$0xf] %vm930_vm12, %v913_v15  ;;  %v974_v17 = vpop.permute.xlu0 %973 }
 0x170   : > { %1010 = vst.msk [vmem:[#allocation2 + $0x30] sm:$0xf] %vm997_vm13, %v974_v17 }
 0x172   : > { %v976_v49 = vpop.permute.xlu1 %975 }
 0x173   : > { %1011 = vst.msk [vmem:[#allocation2 + $0x34] sm:$0xf] %vm997_vm13, %v976_v49  ;;  %v978_v18 = vpop.permute.xlu0 %977 }
 0x174   : > { %1012 = vst.msk [vmem:[#allocation2 + $0x38] sm:$0xf] %vm997_vm13, %v978_v18 }
 0x176   : > { %v980_v19 = vpop.permute.xlu1 %979 }
 0x177   : > { %1013 = vst.msk [vmem:[#allocation2 + $0x3c] sm:$0xf] %vm997_vm13, %v980_v19  ;;  %v1063_v20 = vpop.permute.xlu0 %1062 }
 0x178   : > { %1099 = vst.msk [vmem:[#allocation2 + $0x30] sm:$0xf] %vm1086_vm14, %v1063_v20 }
 0x17a   : > { %v1065_v23 = vpop.permute.xlu1 %1064 }
 0x17b   : > { %1100 = vst.msk [vmem:[#allocation2 + $0x34] sm:$0xf] %vm1086_vm14, %v1065_v23  ;;  %v1067_v24 = vpop.permute.xlu0 %1066 }
 0x17c   : > { %1101 = vst.msk [vmem:[#allocation2 + $0x38] sm:$0xf] %vm1086_vm14, %v1067_v24 }
 0x17e   : > { %v1069_v25 = vpop.permute.xlu1 %1068 }
 0x17f   : > { %1102 = vst.msk [vmem:[#allocation2 + $0x3c] sm:$0xf] %vm1086_vm14, %v1069_v25  ;;  %v1136_v27 = vpop.permute.xlu0 %1135 }
 0x180   : > { %1172 = vst.msk [vmem:[#allocation2 + $0x30] sm:$0xf] %vm1159_vm15, %v1136_v27 }
 0x182   : > { %v1138_v28 = vpop.permute.xlu1 %1137 }
 0x183   : > { %1173 = vst.msk [vmem:[#allocation2 + $0x34] sm:$0xf] %vm1159_vm15, %v1138_v28  ;;  %v1140_v22 = vpop.permute.xlu0 %1139 }
 0x184   : > { %1174 = vst.msk [vmem:[#allocation2 + $0x38] sm:$0xf] %vm1159_vm15, %v1140_v22 }
 0x186   : > { %v1142_v38 = vpop.permute.xlu1 %1141 }
 0x187   : > { %1175 = vst.msk [vmem:[#allocation2 + $0x3c] sm:$0xf] %vm1159_vm15, %v1142_v38 }
 0x18a   : > { %v1801_v29 = vld [vmem:[#allocation2 + $0x30] sm:$0xff]  }
 0x18b   : > { %1731 = vmatprep.mubr.msk.bf16.mxu1 %vm1252_vm0, %v1801_v29 }
 0x18e   : > { %v1802_v30 = vld [vmem:[#allocation2 + $0x38] sm:$0xff]  }
 0x18f   : > { %1732 = vmatmul.mubr.msk.bf16.gmra.mxu1 %vm1252_vm0, %v1802_v30 }
 0x193   : > { %v1721_v32 = vpop.f32.mrf.mxu0 }
 0x194   : > { %1474 = vst.msk [vmem:[%s2551_s29 + $0x10] sm:$0xff] %vm1378_vm1, %v1721_v32  ;;  %v1420_v4 = vmul.f32 %v1721_v32, %v1721_v32  ;;  %v1382_v43 = vsel %vm1378_vm1, %v1721_v32, 0.0 }
 0x195   : > { %v1315_v33 = vpop.f32.mrf.mxu0 }
 0x196   : > { %1472 = vst.msk [vmem:[%s2551_s29] sm:$0xff] %vm1378_vm1, %v1315_v33  ;;  %v1418_v35 = vmul.f32 %v1315_v33, %v1315_v33  ;;  %v1379_v42 = vsel %vm1378_vm1, %v1315_v33, 0.0  ;;  %v1437_v46 = vsel %vm1378_vm1, %v1420_v4, 0.0 }
 0x197   : > { %v1722_v34 = vpop.f32.mrf.mxu0 }
 0x198   : > { %1475 = vst.msk [vmem:[%s2551_s29 + $0x18] sm:$0xff] %vm1378_vm1, %v1722_v34  ;;  %v1434_v40 = vsel %vm1378_vm1, %v1418_v35, 0.0  ;;  %v1421_v16 = vmul.f32 %v1722_v34, %v1722_v34  ;;  %v1384_v47 = vsel %vm1378_vm1, %v1722_v34, 0.0 }
 0x199   : > { %v1318_v37 = vpop.f32.mrf.mxu0 }
 0x19a   : > { %v1380_v36 = vsel %vm1378_vm1, %v1318_v37, 0.0  ;;  %v1419_v39 = vmul.f32 %v1318_v37, %v1318_v37  ;;  %1473 = vst.msk [vmem:[%s2551_s29 + $0x8] sm:$0xff] %vm1378_vm1, %v1318_v37  ;;  %v1439_v51 = vsel %vm1378_vm1, %v1421_v16, 0.0 }
 0x19b   : > { %v1381_v41 = vadd.f32 %v1380_v36, %v1379_v42 }
 0x19c   : > { %v1435_v21 = vsel %vm1378_vm1, %v1419_v39, 0.0 }
 0x19d   : > { %v1383_v44 = vadd.f32 %v1382_v43, %v1381_v41  ;;  %v1436_v45 = vadd.f32 %v1435_v21, %v1434_v40 }
 0x19f   : > { %v1438_v48 = vadd.f32 %v1437_v46, %v1436_v45  ;;  %v1385_v50 = vadd.f32 %v1384_v47, %v1383_v44 }
 0x1a1   : > { %v1440_v52 = vadd.f32 %v1439_v51, %v1438_v48 }
 0x1d3   : > { %v1725_v53 = vpop.f32.mrf.mxu0 }
 0x1d4   : > { %1478 = vst.msk [vmem:[%s2551_s29 + $0x30] sm:$0xff] %vm1378_vm1, %v1725_v53  ;;  %v1424_v61 = vmul.f32 %v1725_v53, %v1725_v53  ;;  %v1390_v1 = vsel %vm1378_vm1, %v1725_v53, 0.0 }
 0x1d5   : > { %v1331_v11 = vpop.f32.mrf.mxu0 }
 0x1d6   : > { %v1386_v55 = vsel %vm1378_vm1, %v1331_v11, 0.0  ;;  %v1422_v56 = vmul.f32 %v1331_v11, %v1331_v11  ;;  %1476 = vst.msk [vmem:[%s2551_s29 + $0x20] sm:$0xff] %vm1378_vm1, %v1331_v11  ;;  %v1445_v7 = vsel %vm1378_vm1, %v1424_v61, 0.0 }
 0x1d7   : > { %v1387_v9 = vadd.f32 %v1386_v55, %v1385_v50  ;;  %v1726_v57 = vpop.f32.mrf.mxu0 }
 0x1d8   : > { %v1441_v58 = vsel %vm1378_vm1, %v1422_v56, 0.0  ;;  %1479 = vst.msk [vmem:[%s2551_s29 + $0x38] sm:$0xff] %vm1378_vm1, %v1726_v57  ;;  %v1425_v2 = vmul.f32 %v1726_v57, %v1726_v57  ;;  %v1392_v8 = vsel %vm1378_vm1, %v1726_v57, 0.0 }
 0x1d9   : > { %v1442_v59 = vadd.f32 %v1441_v58, %v1440_v52  ;;  %v1334_v60 = vpop.f32.mrf.mxu0 }
 0x1da   : > { %v1388_v62 = vsel %vm1378_vm1, %v1334_v60, 0.0  ;;  %v1423_v63 = vmul.f32 %v1334_v60, %v1334_v60  ;;  %1477 = vst.msk [vmem:[%s2551_s29 + $0x28] sm:$0xff] %vm1378_vm1, %v1334_v60  ;;  %v1447_v26 = vsel %vm1378_vm1, %v1425_v2, 0.0 }
 0x1db   : > { %v1389_v0 = vadd.f32 %v1388_v62, %v1387_v9 }
 0x1dc   : > { %v1443_v3 = vsel %vm1378_vm1, %v1423_v63, 0.0 }
 0x1dd   : > { %v1391_v5 = vadd.f32 %v1390_v1, %v1389_v0  ;;  %v1444_v6 = vadd.f32 %v1443_v3, %v1442_v59 }
 0x1df   : > { %v1446_v10 = vadd.f32 %v1445_v7, %v1444_v6  ;;  %v1393_v31 = vadd.f32 %v1392_v8, %v1391_v5 }
 0x1e1   : > { %v1448_v12 = vadd.f32 %v1447_v26, %v1446_v10 }
 0x213   : > { %v1729_v13 = vpop.f32.mrf.mxu1 }
 0x214   : > { %1482 = vst.msk [vmem:[%s2551_s29 + $0x50] sm:$0xff] %vm1378_vm1, %v1729_v13  ;;  %v1428_v28 = vmul.f32 %v1729_v13, %v1729_v13  ;;  %v1398_v38 = vsel %vm1378_vm1, %v1729_v13, 0.0 }
 0x215   : > { %v1347_v14 = vpop.f32.mrf.mxu1 }
 0x216   : > { %1480 = vst.msk [vmem:[%s2551_s29 + $0x40] sm:$0xff] %vm1378_vm1, %v1347_v14  ;;  %v1426_v17 = vmul.f32 %v1347_v14, %v1347_v14  ;;  %v1394_v49 = vsel %vm1378_vm1, %v1347_v14, 0.0  ;;  %v1453_v32 = vsel %vm1378_vm1, %v1428_v28, 0.0 }
 0x217   : > { %v1730_v54 = vpop.f32.mrf.mxu1  ;;  %v1395_v23 = vadd.f32 %v1394_v49, %v1393_v31 }
 0x218   : > { %1483 = vst.msk [vmem:[%s2551_s29 + $0x58] sm:$0xff] %vm1378_vm1, %v1730_v54  ;;  %v1449_v19 = vsel %vm1378_vm1, %v1426_v17, 0.0  ;;  %v1429_v33 = vmul.f32 %v1730_v54, %v1730_v54  ;;  %v1400_v37 = vsel %vm1378_vm1, %v1730_v54, 0.0 }
 0x219   : > { %v1350_v15 = vpop.f32.mrf.mxu1  ;;  %v1450_v25 = vadd.f32 %v1449_v19, %v1448_v12 }
 0x21a   : > { %1481 = vst.msk [vmem:[%s2551_s29 + $0x48] sm:$0xff] %vm1378_vm1, %v1350_v15  ;;  %v1427_v18 = vmul.f32 %v1350_v15, %v1350_v15  ;;  %v1396_v20 = vsel %vm1378_vm1, %v1350_v15, 0.0  ;;  %v1455_v41 = vsel %vm1378_vm1, %v1429_v33, 0.0 }
 0x21b   : > { %v1397_v27 = vadd.f32 %v1396_v20, %v1395_v23 }
 0x21c   : > { %v1451_v24 = vsel %vm1378_vm1, %v1427_v18, 0.0 }
 0x21d   : > { %v1452_v22 = vadd.f32 %v1451_v24, %v1450_v25  ;;  %v1399_v29 = vadd.f32 %v1398_v38, %v1397_v27 }
 0x21f   : > { %v1454_v34 = vadd.f32 %v1453_v32, %v1452_v22  ;;  %v1401_v36 = vadd.f32 %v1400_v37, %v1399_v29 }
 0x221   : > { %v1456_v16 = vadd.f32 %v1455_v41, %v1454_v34 }
 0x24f   : > { %v1733_v30 = vpop.f32.mrf.mxu1 }
 0x250   : > { %1486 = vst.msk [vmem:[%s2551_s29 + $0x70] sm:$0xff] %vm1378_vm1, %v1733_v30  ;;  %v1432_v44 = vmul.f32 %v1733_v30, %v1733_v30  ;;  %v1406_v50 = vsel %vm1378_vm1, %v1733_v30, 0.0 }
 0x251   : > { %v1363_v35 = vpop.f32.mrf.mxu1 }
 0x252   : > { %v1402_v4 = vsel %vm1378_vm1, %v1363_v35, 0.0  ;;  %v1430_v42 = vmul.f32 %v1363_v35, %v1363_v35  ;;  %1484 = vst.msk [vmem:[%s2551_s29 + $0x60] sm:$0xff] %vm1378_vm1, %v1363_v35  ;;  %v1461_v55 = vsel %vm1378_vm1, %v1432_v44, 0.0 }
 0x253   : > { %v1734_v39 = vpop.f32.mrf.mxu1  ;;  %v1403_v40 = vadd.f32 %v1402_v4, %v1401_v36 }
 0x254   : > { %v1457_v43 = vsel %vm1378_vm1, %v1430_v42, 0.0  ;;  %1487 = vst.msk [vmem:[%s2551_s29 + $0x78] sm:$0xff] %vm1378_vm1, %v1734_v39  ;;  %v1433_v51 = vmul.f32 %v1734_v39, %v1734_v39  ;;  %v1408_v56 = vsel %vm1378_vm1, %v1734_v39, 0.0 }
 0x255   : > { %v1366_v21 = vpop.f32.mrf.mxu1  ;;  %v1458_v47 = vadd.f32 %v1457_v43, %v1456_v16 }
 0x256   : > { %v1404_v45 = vsel %vm1378_vm1, %v1366_v21, 0.0  ;;  %v1431_v46 = vmul.f32 %v1366_v21, %v1366_v21  ;;  %1485 = vst.msk [vmem:[%s2551_s29 + $0x68] sm:$0xff] %vm1378_vm1, %v1366_v21  ;;  %v1463_v58 = vsel %vm1378_vm1, %v1433_v51, 0.0 }
 0x257   : > { %v1405_v48 = vadd.f32 %v1404_v45, %v1403_v40 }
 0x258   : > { %v1459_v52 = vsel %vm1378_vm1, %v1431_v46, 0.0 }
 0x259   : > { %v1407_v53 = vadd.f32 %v1406_v50, %v1405_v48  ;;  %v1460_v11 = vadd.f32 %v1459_v52, %v1458_v47 }
 0x25b   : > { %v1409_v9 = vadd.f32 %v1408_v56, %v1407_v53  ;;  %v1462_v57 = vadd.f32 %v1461_v55, %v1460_v11 }
 0x25d   : > { %v1410_v59 = vrot.slane %v1409_v9, 4  ;;  %v1464_v60 = vadd.f32 %v1463_v58, %v1462_v57 }
 0x25f   : > { %v1411_v61 = vadd.f32 %v1410_v59, %v1409_v9  ;;  %v1465_v62 = vrot.slane %v1464_v60, 4 }
 0x261   : > { %v1412_v63 = vrot.slane %v1411_v61, 2  ;;  %v1466_v0 = vadd.f32 %v1465_v62, %v1464_v60 }
 0x263   : > { %v1413_v1 = vadd.f32 %v1412_v63, %v1411_v61  ;;  %v1467_v2 = vrot.slane %v1466_v0, 2 }
 0x265   : > { %v1414_v3 = vrot.slane %v1413_v1, 1  ;;  %v1468_v5 = vadd.f32 %v1467_v2, %v1466_v0 }
 0x267   : > { %v1415_v6 = vadd.f32 %v1414_v3, %v1413_v1  ;;  %v1469_v7 = vrot.slane %v1468_v5, 1 }
 0x269   : > { %1417 = vst.msk [vmem:[%s250_s8] sm:$0x1] %vm1416_vm2, %v1415_v6  ;;  %v1470_v8 = vadd.f32 %v1469_v7, %v1468_v5 }
 0x26b   : > { %1471 = vst.msk [vmem:[%s257_s11] sm:$0x1] %vm1416_vm2, %v1470_v8 }
 0x26c PF: > { %s15_s19 = sadd.s32 1, %s1841_s19   ;;  %s2650_s15 = smov %s1833_s17 }
 0x26d   : > { %p12_p8 = scmp.ge.s32.totalorder %s15_s19, 6   ;;  %s2651_s16 = smov %s1837_s18 }
 0x26e   : > { %s2652_s17 = smov %s2655_s20  ;;  %s2653_s18 = smov %s2659_s21 }
 0x26f   :  { %14 = sbr.rel (!%p12_p8) target bundleno = 3 (0x3), region = 83 }

</bundles_post_ra>
